<compile_context>
chip_gen: v6e
topology: v6e:2x2x1
jax: 0.10.0
libtpu: 0.0.40
codegen_flags: <defaults>
</compile_context>

<pallas_src>
import math

import jax
import jax.numpy as jnp
from jax.experimental import pallas as pl
from jax.experimental.pallas import tpu as pltpu

DAYS_IN_MONTH = 30.0
MONTHS_IN_YEAR = 12.0
_TWO_PI = 2.0 * math.pi

_LANE = 128             # lane width of each reshaped row
_DEF_TILE_ROWS = 2048   # (2048, 128) f32 = 1 MiB/buffer; 6 bufs x2 = 12 MiB
_MIN_PALLAS_ROWS = 16384  # below this, plain fused XLA beats the kernel


def _trig_encode_kernel(day_ref, month_ref, sd_ref, cd_ref, sm_ref, cm_ref):
    """Dense trig encoding on (tile_rows, 128) blocks.

    day_ref/month_ref: (tr, 128) f32
    outputs:           (tr, 128) f32 each: sin_day, cos_day, sin_month, cos_month
    """
    day_angle = day_ref[...] * (_TWO_PI / DAYS_IN_MONTH)      # scalar immediates
    month_angle = month_ref[...] * (_TWO_PI / MONTHS_IN_YEAR)
    sd_ref[...] = jnp.sin(day_angle)
    cd_ref[...] = jnp.cos(day_angle)
    sm_ref[...] = jnp.sin(month_angle)
    cm_ref[...] = jnp.cos(month_angle)


def trigonometric_encoding(values, day, month, *,
                           tile_rows=_DEF_TILE_ROWS,
                           min_pallas_rows=_MIN_PALLAS_ROWS):
    """Returns (N, C + 4) float32: [values | sin_day | cos_day | sin_month | cos_month]."""
    n = day.shape[0]
    values = values.astype(jnp.float32)
    day = day.astype(jnp.float32)
    month = month.astype(jnp.float32)

    if n < min_pallas_rows:
        # Small-N fast path: let XLA fuse the trig into the concat write.
        return jnp.concatenate(
            [
                values,
                jnp.sin(_TWO_PI * day / DAYS_IN_MONTH)[:, None],
                jnp.cos(_TWO_PI * day / DAYS_IN_MONTH)[:, None],
                jnp.sin(_TWO_PI * month / MONTHS_IN_YEAR)[:, None],
                jnp.cos(_TWO_PI * month / MONTHS_IN_YEAR)[:, None],
            ],
            axis=-1,
        )

    # Sublane/lane-dense layout: (N,) -> (rows, 128) row-major.
    n_pad = int(pl.cdiv(n, _LANE)) * _LANE
    rows = n_pad // _LANE
    pad = n_pad - n
    day2 = jnp.pad(day, (0, pad)).reshape(rows, _LANE)
    month2 = jnp.pad(month, (0, pad)).reshape(rows, _LANE)

    # Block = full array if it fits one tile (always legal); otherwise a
    # (tile_rows, 128) block (multiple of (8, 128)); ragged last block is
    # padded by Pallas and the garbage tail is discarded by the final slice.
    tile_r = rows if rows <= tile_rows else tile_rows
    grid = (int(pl.cdiv(rows, tile_r)),)

    blk = pl.BlockSpec((tile_r, _LANE), lambda i: (i, 0))
    out_sds = jax.ShapeDtypeStruct((rows, _LANE), jnp.float32)

    sd, cd, sm, cm = pl.pallas_call(
        _trig_encode_kernel,
        out_shape=(out_sds, out_sds, out_sds, out_sds),
        grid=grid,
        in_specs=[blk, blk],
        out_specs=(blk, blk, blk, blk),
        compiler_params=pltpu.CompilerParams(
            dimension_semantics=("parallel",)
        ),
        cost_estimate=pl.CostEstimate(
            flops=2 * n_pad,
            transcendentals=4 * n_pad,
            bytes_accessed=24 * n_pad,
        ),
    )(day2, month2)

    trig_cols = [a.reshape(n_pad)[:n, None] for a in (sd, cd, sm, cm)]
    return jnp.concatenate([values] + trig_cols, axis=-1)


def _reference(values, day, month):
    two_pi = 2.0 * jnp.pi
    return jnp.concatenate(
        [
            values.astype(jnp.float32),
            jnp.sin(two_pi * day / DAYS_IN_MONTH)[:, None],
            jnp.cos(two_pi * day / DAYS_IN_MONTH)[:, None],
            jnp.sin(two_pi * month / MONTHS_IN_YEAR)[:, None],
            jnp.cos(two_pi * month / MONTHS_IN_YEAR)[:, None],
        ],
        axis=-1,
    )


if __name__ == "__main__":
    # Small synthetic "CSV" #1: exercises the small-N XLA fast path.
    key = jax.random.PRNGKey(0)
    k_vals, k_day, k_month, k2v, k2d, k2m = jax.random.split(key, 6)

    N, C = 16, 8
    values = jax.random.normal(k_vals, (N, C), dtype=jnp.float32)
    day = jax.random.randint(k_day, (N,), 1, 31).astype(jnp.float32)
    month = jax.random.randint(k_month, (N,), 1, 13).astype(jnp.float32)

    out = jax.block_until_ready(trigonometric_encoding(values, day, month))
    assert out.shape == (N, C + 4)
    assert out.dtype == jnp.float32
    assert jnp.allclose(out, _reference(values, day, month), atol=1e-5, rtol=1e-5)

    # Synthetic "CSV" #2: forces the Pallas path (min_pallas_rows=0), ragged N
    # so the lane-pad + slice path is covered. Shapes kept small.
    N2, C2 = 5000, 3
    values2 = jax.random.normal(k2v, (N2, C2), dtype=jnp.float32)
    day2 = jax.random.randint(k2d, (N2,), 1, 31).astype(jnp.float32)
    month2 = jax.random.randint(k2m, (N2,), 1, 13).astype(jnp.float32)

    out2 = jax.block_until_ready(
        trigonometric_encoding(values2, day2, month2, min_pallas_rows=0)
    )
    assert out2.shape == (N2, C2 + 4)
    assert jnp.allclose(out2, _reference(values2, day2, month2), atol=1e-5, rtol=1e-5)

    print("KERNEL_OK")
</pallas_src>

<mosaic_0001>
module attributes {stable_mosaic.version = 11 : i64} {
  func.func @_trig_encode_kernel(%arg0: i32, %arg1: memref<40x128xf32, #tpu.memory_space<vmem>>, %arg2: memref<40x128xf32, #tpu.memory_space<vmem>>, %arg3: memref<40x128xf32, #tpu.memory_space<vmem>>, %arg4: memref<40x128xf32, #tpu.memory_space<vmem>>, %arg5: memref<40x128xf32, #tpu.memory_space<vmem>>, %arg6: memref<40x128xf32, #tpu.memory_space<vmem>>) attributes {dimension_semantics = [#tpu.dimension_semantics<parallel>], iteration_bounds = array<i64: 1>, scalar_prefetch = 0 : i64, scratch_operands = 0 : i64, tpu.core_type = #tpu.core_type<tc>, window_params = [{transform_indices = @transform_0, window_bounds = array<i64: 40, 128>}, {transform_indices = @transform_1, window_bounds = array<i64: 40, 128>}, {transform_indices = @transform_2, window_bounds = array<i64: 40, 128>}, {transform_indices = @transform_3, window_bounds = array<i64: 40, 128>}, {transform_indices = @transform_4, window_bounds = array<i64: 40, 128>}, {transform_indices = @transform_5, window_bounds = array<i64: 40, 128>}]} {
    %c0 = arith.constant 0 : index
    %c0_0 = arith.constant 0 : index
    %0 = vector.load %arg1[%c0, %c0_0] : memref<40x128xf32, #tpu.memory_space<vmem>>, vector<40x128xf32>
    %cst = arith.constant 0.209439516 : f32
    %1 = vector.broadcast %cst : f32 to vector<40x128xf32>
    %2 = arith.mulf %0, %1 : vector<40x128xf32>
    %c0_1 = arith.constant 0 : index
    %c0_2 = arith.constant 0 : index
    %3 = vector.load %arg2[%c0_1, %c0_2] : memref<40x128xf32, #tpu.memory_space<vmem>>, vector<40x128xf32>
    %cst_3 = arith.constant 0.52359879 : f32
    %4 = vector.broadcast %cst_3 : f32 to vector<40x128xf32>
    %5 = arith.mulf %3, %4 : vector<40x128xf32>
    %6 = math.sin %2 : vector<40x128xf32>
    %c0_4 = arith.constant 0 : index
    %c0_5 = arith.constant 0 : index
    %7 = vector.load %arg3[%c0_4, %c0_5] : memref<40x128xf32, #tpu.memory_space<vmem>>, vector<40x128xf32>
    tpu.vector_store %arg3[%c0_4, %c0_5], %6 {strides = array<i32>} : memref<40x128xf32, #tpu.memory_space<vmem>>, vector<40x128xf32>,
    %8 = math.cos %2 : vector<40x128xf32>
    %c0_6 = arith.constant 0 : index
    %c0_7 = arith.constant 0 : index
    %9 = vector.load %arg4[%c0_6, %c0_7] : memref<40x128xf32, #tpu.memory_space<vmem>>, vector<40x128xf32>
    tpu.vector_store %arg4[%c0_6, %c0_7], %8 {strides = array<i32>} : memref<40x128xf32, #tpu.memory_space<vmem>>, vector<40x128xf32>,
    %10 = math.sin %5 : vector<40x128xf32>
    %c0_8 = arith.constant 0 : index
    %c0_9 = arith.constant 0 : index
    %11 = vector.load %arg5[%c0_8, %c0_9] : memref<40x128xf32, #tpu.memory_space<vmem>>, vector<40x128xf32>
    tpu.vector_store %arg5[%c0_8, %c0_9], %10 {strides = array<i32>} : memref<40x128xf32, #tpu.memory_space<vmem>>, vector<40x128xf32>,
    %12 = math.cos %5 : vector<40x128xf32>
    %c0_10 = arith.constant 0 : index
    %c0_11 = arith.constant 0 : index
    %13 = vector.load %arg6[%c0_10, %c0_11] : memref<40x128xf32, #tpu.memory_space<vmem>>, vector<40x128xf32>
    tpu.vector_store %arg6[%c0_10, %c0_11], %12 {strides = array<i32>} : memref<40x128xf32, #tpu.memory_space<vmem>>, vector<40x128xf32>,
    return
  }
  func.func @transform_0(%arg0: i32) -> (i32, i32) {
    %c0_i32 = arith.constant 0 : i32
    %c0_i32_0 = arith.constant 0 : i32
    return %arg0, %c0_i32 : i32, i32
  }
  func.func @transform_1(%arg0: i32) -> (i32, i32) {
    %c0_i32 = arith.constant 0 : i32
    %c0_i32_0 = arith.constant 0 : i32
    return %arg0, %c0_i32 : i32, i32
  }
  func.func @transform_2(%arg0: i32) -> (i32, i32) {
    %c0_i32 = arith.constant 0 : i32
    %c0_i32_0 = arith.constant 0 : i32
    return %arg0, %c0_i32 : i32, i32
  }
  func.func @transform_3(%arg0: i32) -> (i32, i32) {
    %c0_i32 = arith.constant 0 : i32
    %c0_i32_0 = arith.constant 0 : i32
    return %arg0, %c0_i32 : i32, i32
  }
  func.func @transform_4(%arg0: i32) -> (i32, i32) {
    %c0_i32 = arith.constant 0 : i32
    %c0_i32_0 = arith.constant 0 : i32
    return %arg0, %c0_i32 : i32, i32
  }
  func.func @transform_5(%arg0: i32) -> (i32, i32) {
    %c0_i32 = arith.constant 0 : i32
    %c0_i32_0 = arith.constant 0 : i32
    return %arg0, %c0_i32 : i32, i32
  }
}

</mosaic_0001>

<bundles_post_ra>
// kernel: tpu_custom_call.1
= control target key start
LH: loop header
LB: loop body
LE: loop exit
PB: predicated region body
PF: predicated region fallthrough
CT: control target
= control target key end

     0   :  { %11 = vsyncpa [#allocation3], 0  ;;  %s3592_s0 = inlined_call_operand.hbm [shape: f32[40,128], index: 0, kind: input, shape index: {}]   ;;  %s3593_s1 = inlined_call_operand.hbm [shape: f32[40,128], index: 1, kind: input, shape index: {}]   ;;  %s3594_s2 = inlined_call_operand.hbm [shape: f32[40,128], index: 2, kind: output, shape index: {0}]   ;;  %s3595_s3 = inlined_call_operand.hbm [shape: f32[40,128], index: 3, kind: output, shape index: {1}]   ;;  %s3596_s4 = inlined_call_operand.hbm [shape: f32[40,128], index: 4, kind: output, shape index: {2}]   ;;  %s3597_s5 = inlined_call_operand.hbm [shape: f32[40,128], index: 5, kind: output, shape index: {3}]  }
   0x1   :  { %12 = vsyncpa [#allocation6], 0 }
   0x2   :  { %13 = vsyncpa [#allocation4], 0 }
   0x3   :  { %14 = vsyncpa [#allocation9], 0 }
   0x4   :  { %15 = vsyncpa [#allocation12], 0  ;;  %s2525_s18 = smov [#allocation2]  }
   0x5   :  { %s21_s19 = sshll.u32 %s2525_s18, 4  ;;  %s22_s19 = int_to_ptr.vmem [resolvable:$true] %s21_s19 }
   0x6   :  { %s2403_s20 = scalar_lea.vmem %s22_s19, 640  ;;  %p2408_p1 = scmp.lt.s32.totalorder %s22_s19, %s22_s19 }
   0x7   :  { %p2404_p0 = scmp.ne.s32.totalorder %s22_s19, %s2403_s20  ;;  %p2409_p2 = scmp.lt.s32.totalorder %s2403_s20, %s2403_s20 }
   0x9   :  { %p2410_p3 = por %p2409_p2, %p2408_p1 }
   0xb   :  { %p2411_p4 = pnand %p2410_p3, %p2404_p0 }
   0xd   :  { %2414 = shalt.err (!%p2411_p4)
}
   0xe   :  { %s2526_s21 = smov 128   ;;  %s2527_s22 = smov 8  }
   0xf   :  { %27 = dma.hbm_to_vmem [thread:$0]  %s3592_s0, 640, %s22_s19, [#allocation3], %s2526_s21, %s2526_s21, %s2527_s22  }
  0x10   :  { %s2528_s25 = smov [#allocation5]  }
  0x11   :  { %s33_s26 = sshll.u32 %s2528_s25, 4  ;;  %s34_s26 = int_to_ptr.vmem [resolvable:$true] %s33_s26 }
  0x12   :  { %s2423_s27 = scalar_lea.vmem %s34_s26, 640  ;;  %p2428_p6 = scmp.lt.s32.totalorder %s34_s26, %s34_s26 }
  0x13   :  { %p2424_p5 = scmp.ne.s32.totalorder %s34_s26, %s2423_s27  ;;  %p2429_p7 = scmp.lt.s32.totalorder %s2423_s27, %s2423_s27 }
  0x15   :  { %p2430_p8 = por %p2429_p7, %p2428_p6 }
  0x17   :  { %p2431_p9 = pnand %p2430_p8, %p2424_p5 }
  0x19   :  { %2434 = shalt.err (!%p2431_p9)
}
  0x1a   :  { %39 = dma.hbm_to_vmem [thread:$0]  %s3593_s1, 640, %s34_s26, [#allocation6], %s2526_s21, %s2526_s21, %s2527_s22  }
  0x1b   :  { %2515 = dma.done.wait [#allocation3], 640  }
  0x1c   :  { %2516 = vsyncadd [#allocation3], 4294966656 }
  0x1d   :  { %2517 = dma.done.wait [#allocation6], 640  }
  0x1e   :  { %2518 = vsyncadd [#allocation6], 4294966656  ;;  %v46_v0 = vld [vmem:[#allocation2] sm:$0xff]  ;;  %v47_v1 = vld [vmem:[#allocation2 + $0x8] sm:$0xff]  ;;  %v2529_v33 = vmov 683565275  }
  0x1f   :  { %v48_v2 = vld [vmem:[#allocation2 + $0x10] sm:$0xff]  ;;  %v2581_v3 = vmul.f32 0.20943952, %v46_v0  ;;  %v2583_v4 = vmul.f32 0.20943952, %v47_v1  ;;  %s2535_s0 = smov [#allocation8]  }
  0x20   :  { %v2585_v5 = vmul.f32 0.20943952, %v48_v2  ;;  %v2530_v35 = vmov 2475754826   ;;  %v2531_v37 = vmov 2131351028  }
  0x21   :  { %v66_v6 = vand.u32 2147483647, %v2581_v3  ;;  %v69_v7 = vand.u32 2139095040, %v2581_v3  ;;  %v170_v8 = vand.u32 2147483647, %v2583_v4  ;;  %v173_v9 = vand.u32 2139095040, %v2583_v4 }
  0x22   :  { %v277_v14 = vand.u32 2139095040, %v2585_v5  ;;  %v274_v27 = vand.u32 2147483647, %v2585_v5  ;;  %v2532_v39 = vmov 2102212464   ;;  %vm68_vm14 = vcmp.lt.s32.totalorder %v2581_v3, 0 }
  0x23   :  { %v70_v10 = vshrl.u32 %v69_v7, 23  ;;  %v73_v11 = vand.u32 8388607, %v66_v6  ;;  %v174_v12 = vshrl.u32 %v173_v9, 23  ;;  %v177_v13 = vand.u32 8388607, %v170_v8 }
  0x24   :  { %v278_v17 = vshrl.u32 %v277_v14, 23  ;;  %v2533_v41 = vmov 920167782   ;;  %v2534_v49 = vmov 1326507024   ;;  %s2173_s1 = sshll.u32 %s2535_s0, 4  ;;  %s2174_s1 = int_to_ptr.vmem [resolvable:$true] %s2173_s1 }
  0x25   :  { %v2221_v15 = vadd.s32 4294967169, %v70_v10  ;;  %v2225_v16 = vadd.s32 4294967169, %v174_v12  ;;  %v74_v19 = vor.u32 8388608, %v73_v11  ;;  %v178_v20 = vor.u32 8388608, %v177_v13  ;;  %s2536_s30 = smov [#allocation7]   ;;  %s2435_s7 = scalar_lea.vmem %s2174_s1, 640 }
  0x26   :  { %v2229_v22 = vadd.s32 4294967169, %v278_v17  ;;  %s2161_s6 = sshll.u32 %s2536_s30, 4  ;;  %p2436_p10 = scmp.ne.s32.totalorder %s2174_s1, %s2435_s7  ;;  %s2162_s6 = int_to_ptr.vmem [resolvable:$true] %s2161_s6 }
  0x27   :  { %v76_v18 = vadd.s32 1, %v2221_v15  ;;  %v180_v21 = vadd.s32 1, %v2225_v16  ;;  %v2597_v28 = vshll.u32 %v74_v19, 8  ;;  %v2599_v30 = vshll.u32 %v178_v20, 8  ;;  %p2440_p11 = scmp.lt.s32.totalorder %s2174_s1, %s2174_s1  ;;  %p2441_p12 = scmp.lt.s32.totalorder %s2435_s7, %s2435_s7 }
  0x28   :  { %v2601_v31 = vadd.s32 1, %v2229_v22 }
  0x29   :  { %vm77_vm0 = vcmp.gt.s32.totalorder %v76_v18, 0  ;;  %vm181_vm1 = vcmp.gt.s32.totalorder %v180_v21, 0  ;;  %p2442_p13 = por %p2441_p12, %p2440_p11 }
  0x2a   :  { %v78_v23 = vsel %vm77_vm0, %v76_v18, 0  ;;  %v182_v26 = vsel %vm181_vm1, %v180_v21, 0  ;;  %vm285_vm6 = vcmp.gt.s32.totalorder %v2601_v31, 0 }
  0x2b   :  { %v79_v24 = vshrl.u32 %v78_v23, 5  ;;  %v80_v25 = vand.u32 31, %v78_v23  ;;  %v184_v29 = vand.u32 31, %v182_v26  ;;  %v2608_v43 = vshrl.u32 %v182_v26, 5  ;;  %p2443_p0 = pnand %p2442_p13, %p2436_p10 }
  0x2d   :  { %v81_v32 = vsub.s32 32, %v80_v25  ;;  %v83_v34 = vshll.u32 %v2529_v33, %v80_v25  ;;  %v86_v36 = vshll.u32 %v2530_v35, %v80_v25  ;;  %v89_v38 = vshll.u32 %v2531_v37, %v80_v25 }
  0x2e   :  { %v92_v40 = vshll.u32 %v2532_v39, %v80_v25  ;;  %v95_v42 = vshll.u32 %v2533_v41, %v80_v25  ;;  %vm98_vm2 = vcmp.lt.s32.totalorder %v79_v24, 1  ;;  %vm99_vm3 = vcmp.lt.s32.totalorder %v79_v24, 2 }
  0x2f   :  { %v82_v44 = vshrl.u32 %v2529_v33, %v81_v32  ;;  %v84_v45 = vshrl.u32 %v2530_v35, %v81_v32  ;;  %v87_v46 = vshrl.u32 %v2531_v37, %v81_v32  ;;  %v90_v47 = vshrl.u32 %v2532_v39, %v81_v32 }
  0x30   :  { %v93_v48 = vshrl.u32 %v2533_v41, %v81_v32  ;;  %v96_v50 = vshrl.u32 %v2534_v49, %v81_v32  ;;  %vm101_vm4 = vcmp.lt.s32.totalorder %v79_v24, 4  ;;  %v185_v54 = vsub.s32 32, %v184_v29 }
  0x31   :  { %v85_v51 = vor.u32 %v84_v45, %v83_v34  ;;  %v88_v52 = vor.u32 %v87_v46, %v86_v36  ;;  %v91_v53 = vor.u32 %v90_v47, %v89_v38  ;;  %vm100_vm5 = vcmp.lt.s32.totalorder %v79_v24, 3 }
  0x32   :  { %v94_v55 = vor.u32 %v93_v48, %v92_v40  ;;  %v97_v56 = vor.u32 %v96_v50, %v95_v42  ;;  %v187_v57 = vshll.u32 %v2529_v33, %v184_v29  ;;  %v190_v1 = vshll.u32 %v2530_v35, %v184_v29 }
  0x33   :  { %v102_v58 = vsel %vm98_vm2, %v82_v44, %v85_v51  ;;  %v103_v59 = vsel %vm101_vm4, %v91_v53, 2102212464  ;;  %v106_v60 = vsel %vm98_vm2, %v85_v51, %v88_v52  ;;  %v110_v61 = vsel %vm98_vm2, %v88_v52, %v91_v53 }
  0x34   :  { %v104_v62 = vsel %vm100_vm5, %v88_v52, %v103_v59  ;;  %v107_v63 = vsel %vm101_vm4, %v94_v55, 920167782  ;;  %v111_v0 = vsel %vm101_vm4, %v97_v56, 1326507024  ;;  %v186_v9 = vshrl.u32 %v2529_v33, %v185_v54  ;;  %v49_v52 = vld [vmem:[#allocation2 + $0x18] sm:$0xff] }
  0x35   :  { %v108_v2 = vsel %vm100_vm5, %v91_v53, %v107_v63  ;;  %v112_v7 = vsel %vm100_vm5, %v94_v55, %v111_v0  ;;  %v188_v10 = vshrl.u32 %v2530_v35, %v185_v54  ;;  %v105_v11 = vsel %vm99_vm3, %v102_v58, %v104_v62 }
  0x36   :  { %v109_v12 = vsel %vm99_vm3, %v106_v60, %v108_v2  ;;  %v113_v13 = vsel %vm99_vm3, %v110_v61, %v112_v7  ;;  %v191_v14 = vshrl.u32 %v2531_v37, %v185_v54  ;;  %v193_v21 = vshll.u32 %v2531_v37, %v184_v29 }
  0x37   :  { %v2629_v15 = vmul.u32.u64.low %v2597_v28, %v113_v13  ;;  %v2630_v16 = vmul.u32.u64.high %v2597_v28, %v113_v13, %v2629_v15  ;;  %v2633_v17 = vmul.u32.u64.low %v2597_v28, %v109_v12  ;;  %v2634_v18 = vmul.u32.u64.high %v2597_v28, %v109_v12, %v2633_v17 }
  0x38   :  { %v189_v19 = vor.u32 %v188_v10, %v187_v57  ;;  %v192_v20 = vor.u32 %v191_v14, %v190_v1  ;;  %v194_v22 = vshrl.u32 %v2532_v39, %v185_v54  ;;  %v196_v23 = vshll.u32 %v2532_v39, %v184_v29 }
  0x39   :  { %v197_v24 = vshrl.u32 %v2533_v41, %v185_v54  ;;  %v199_v25 = vshll.u32 %v2533_v41, %v184_v29  ;;  %v200_v26 = vshrl.u32 %v2534_v49, %v185_v54  ;;  %v121_v32 = vmul.u32 %v2597_v28, %v105_v11 }
  0x3a   :  { %v195_v34 = vor.u32 %v194_v22, %v193_v21  ;;  %vm202_vm7 = vcmp.lt.s32.totalorder %v2608_v43, 1  ;;  %vm203_vm8 = vcmp.lt.s32.totalorder %v2608_v43, 2  ;;  %vm123_vm9 = vc.u32 %v2630_v16, %v2633_v17 }
  0x3b   :  { %v124_v36 = vadd.s32 1, %v2634_v18  ;;  %v198_v38 = vor.u32 %v197_v24, %v196_v23  ;;  %vm204_vm10 = vcmp.lt.s32.totalorder %v2608_v43, 3  ;;  %v201_v40 = vor.u32 %v200_v26, %v199_v25 }
  0x3c   :  { %vm205_vm11 = vcmp.lt.s32.totalorder %v2608_v43, 4  ;;  %v206_v29 = vsel %vm202_vm7, %v186_v9, %v189_v19  ;;  %v210_v42 = vsel %vm202_vm7, %v189_v19, %v192_v20  ;;  %v214_v46 = vsel %vm202_vm7, %v192_v20, %v195_v34 }
  0x3d   :  { %v125_v28 = vsel %vm123_vm9, %v124_v36, %v2634_v18  ;;  %v207_v44 = vsel %vm205_vm11, %v195_v34, 2102212464  ;;  %v211_v45 = vsel %vm205_vm11, %v198_v38, 920167782  ;;  %v215_v51 = vsel %vm205_vm11, %v201_v40, 1326507024 }
  0x3e   :  { %v126_v47 = vadd.s32 %v125_v28, %v121_v32  ;;  %v208_v48 = vsel %vm204_vm10, %v192_v20, %v207_v44  ;;  %v212_v50 = vsel %vm204_vm10, %v195_v34, %v211_v45  ;;  %v216_v55 = vsel %vm204_vm10, %v198_v38, %v215_v51 }
  0x3f   :  { %v209_v53 = vsel %vm203_vm8, %v206_v29, %v208_v48  ;;  %v213_v54 = vsel %vm203_vm8, %v210_v42, %v212_v50  ;;  %v286_v56 = vsel %vm285_vm6, %v2601_v31, 0  ;;  %v217_v58 = vsel %vm203_vm8, %v214_v46, %v216_v55 }
  0x40   :  { %v127_v57 = vadd.s32 536870912, %v126_v47  ;;  %v2668_v59 = vmul.u32.u64.low %v2599_v30, %v213_v54  ;;  %v2669_v60 = vmul.u32.u64.high %v2599_v30, %v213_v54, %v2668_v59  ;;  %v281_v63 = vand.u32 8388607, %v274_v27 }
  0x41   :  { %v2673_v61 = vmul.u32.u64.low %v2599_v30, %v217_v58  ;;  %v2674_v62 = vmul.u32.u64.high %v2599_v30, %v217_v58, %v2673_v61  ;;  %v2678_v0 = vmul.f32 0.20943952, %v49_v52  ;;  %v288_v31 = vand.u32 31, %v286_v56 }
  0x42   :  { %v2680_v1 = vshrl.u32 %v127_v57, 30  ;;  %v225_v43 = vmul.u32 %v2599_v30, %v209_v53  ;;  %v228_v7 = vadd.s32 1, %v2669_v60  ;;  %v282_v10 = vor.u32 8388608, %v281_v63 }
  0x43   :  { %v289_v9 = vsub.s32 32, %v288_v31  ;;  %vm227_vm12 = vc.u32 %v2674_v62, %v2668_v59  ;;  %v381_v11 = vand.u32 2139095040, %v2678_v0  ;;  %v2691_v14 = vshrl.u32 %v286_v56, 5 }
  0x44   :  { %v129_v2 = vshll.u32 %v2680_v1, 30  ;;  %v229_v13 = vsel %vm227_vm12, %v228_v7, %v2669_v60  ;;  %v291_v30 = vshll.u32 %v2529_v33, %v288_v31  ;;  %v294_v19 = vshll.u32 %v2530_v35, %v288_v31 }
  0x45   :  { %v230_v15 = vadd.s32 %v229_v13, %v225_v43  ;;  %v292_v18 = vshrl.u32 %v2530_v35, %v289_v9  ;;  %v295_v21 = vshrl.u32 %v2531_v37, %v289_v9  ;;  %v297_v22 = vshll.u32 %v2531_v37, %v288_v31 }
  0x46   :  { %v2688_v12 = vsub.s32 %v126_v47, %v129_v2  ;;  %v298_v23 = vshrl.u32 %v2532_v39, %v289_v9  ;;  %v300_v25 = vshll.u32 %v2532_v39, %v288_v31  ;;  %v2701_v26 = vshll.u32 %v282_v10, 8 }
  0x47   :  { %v231_v24 = vadd.s32 536870912, %v230_v15  ;;  %v382_v32 = vshrl.u32 %v381_v11, 23  ;;  %v122_v34 = vadd.s32 %v2633_v17, %v2630_v16  ;;  %v290_v38 = vshrl.u32 %v2529_v33, %v289_v9 }
  0x48   :  { %v132_v20 = vsub.s32 0, %v2688_v12  ;;  %vm309_vm13 = vcmp.lt.s32.totalorder %v2691_v14, 4  ;;  %v293_v29 = vor.u32 %v292_v18, %v291_v30  ;;  %v301_v42 = vshrl.u32 %v2533_v41, %v289_v9 }
  0x49   :  { %v2709_v40 = vshrl.u32 %v231_v24, 30  ;;  %v303_v28 = vshll.u32 %v2533_v41, %v288_v31  ;;  %v296_v45 = vor.u32 %v295_v21, %v294_v19  ;;  %v299_v46 = vor.u32 %v298_v23, %v297_v22 }
  0x4a   :  { %v2222_v36 = vmin.u32 %v132_v20, %v2688_v12  ;;  %v304_v16 = vshrl.u32 %v2534_v49, %v289_v9  ;;  %v302_v47 = vor.u32 %v301_v42, %v300_v25  ;;  %vm306_vm15 = vcmp.lt.s32.totalorder %v2691_v14, 1 }
  0x4b   :  { %v233_v17 = vshll.u32 %v2709_v40, 30  ;;  %vm308_vm0 = vcmp.lt.s32.totalorder %v2691_v14, 3  ;;  %vm307_vm1 = vcmp.lt.s32.totalorder %v2691_v14, 2  ;;  %v311_v51 = vsel %vm309_vm13, %v299_v46, 2102212464 }
  0x4c   :  { %v134_v44 = vclz %v2222_v36  ;;  %v305_v50 = vor.u32 %v304_v16, %v303_v28  ;;  %vm2722_vm2 = vcmp.le.f32.partialorder %v66_v6, 0.7853982  ;;  %v152_v53 = vsub.s32 4, %v2680_v1 }
  0x4d   :  { %v2727_v54 = vsub.s32 %v230_v15, %v233_v17  ;;  %v310_v55 = vsel %vm306_vm15, %v290_v38, %v293_v29  ;;  %v315_v56 = vsel %vm309_vm13, %v302_v47, 920167782  ;;  %v314_v57 = vsel %vm306_vm15, %v293_v29, %v296_v45 }
  0x4e   :  { %v2223_v48 = vadd.s32 4294967294, %v134_v44  ;;  %v316_v6 = vsel %vm308_vm0, %v299_v46, %v315_v56  ;;  %v319_v58 = vsel %vm309_vm13, %v305_v50, 1326507024  ;;  %v312_v63 = vsel %vm308_vm0, %v296_v45, %v311_v51 }
  0x4f   :  { %v236_v61 = vsub.s32 0, %v2727_v54  ;;  %v318_v31 = vsel %vm306_vm15, %v296_v45, %v299_v46  ;;  %vm172_vm4 = vcmp.lt.s32.totalorder %v2583_v4, 0  ;;  %v320_v9 = vsel %vm308_vm0, %v302_v47, %v319_v58 }
  0x50   :  { %vm2224_vm3 = vcmp.lt.s32.totalorder %v2223_v48, 0  ;;  %v317_v11 = vsel %vm307_vm1, %v314_v57, %v316_v6  ;;  %v378_v13 = vand.u32 2147483647, %v2678_v0  ;;  %v2233_v15 = vadd.s32 4294967169, %v382_v32 }
  0x51   :  { %v137_v60 = vsel %vm2224_vm3, 0, %v2223_v48  ;;  %v2226_v10 = vmin.u32 %v236_v61, %v2727_v54  ;;  %v321_v19 = vsel %vm307_vm1, %v318_v31, %v320_v9  ;;  %v313_v21 = vsel %vm307_vm1, %v310_v55, %v312_v63 }
  0x52   :  { %v138_v43 = vsub.s32 32, %v137_v60  ;;  %v139_v2 = vshll.u32 %v2688_v12, %v137_v60  ;;  %v142_v7 = vsub.s32 4294967266, %v137_v60  ;;  %v153_v12 = vsel %vm68_vm14, %v152_v53, %v2680_v1 }
  0x53   :  { %v238_v20 = vclz %v2226_v10  ;;  %v2760_v22 = vmul.u32.u64.low %v2701_v26, %v321_v19  ;;  %v2761_v23 = vmul.u32.u64.high %v2701_v26, %v321_v19, %v2760_v22  ;;  %v256_v1 = vsub.s32 4, %v2709_v40 }
  0x54   :  { %v140_v30 = vshrl.u32 %v122_v34, %v138_v43  ;;  %v143_v18 = vadd.s32 127, %v142_v7  ;;  %v2764_v32 = vmul.u32.u64.low %v2701_v26, %v317_v11  ;;  %v2765_v34 = vmul.u32.u64.high %v2701_v26, %v317_v11, %v2764_v32 }
  0x55   :  { %v2227_v36 = vadd.s32 4294967294, %v238_v20  ;;  %v2771_v38 = vand.u32 8388607, %v378_v13  ;;  %v388_v14 = vadd.s32 1, %v2233_v15  ;;  %v2775_v28 = vsel %vm2722_vm2, 0, %v153_v12 }
  0x56   :  { %v141_v24 = vor.u32 %v140_v30, %v139_v2  ;;  %v144_v25 = vshll.u32 %v143_v18, 23  ;;  %v226_v44 = vadd.s32 %v2668_v59, %v2674_v62  ;;  %v329_v45 = vmul.u32 %v2701_v26, %v313_v21 }
  0x57   :  { %vm2228_vm5 = vcmp.lt.s32.totalorder %v2227_v36, 0  ;;  %vm331_vm6 = vc.u32 %v2761_v23, %v2764_v32  ;;  %vm389_vm7 = vcmp.gt.s32.totalorder %v388_v14, 0  ;;  %v332_v17 = vadd.s32 1, %v2765_v34 }
  0x58   :  { %v145_v29 = vor.u32 4788187, %v144_v25  ;;  %v148_v42 = vcvt.s32.f32 %v141_v24  ;;  %v241_v16 = vsel %vm2228_vm5, 0, %v2227_v36  ;;  %v390_v47 = vsel %vm389_vm7, %v388_v14, 0 }
  0x59   :  { %v242_v48 = vsub.s32 32, %v241_v16  ;;  %v243_v50 = vshll.u32 %v2727_v54, %v241_v16  ;;  %v246_v51 = vsub.s32 4294967266, %v241_v16  ;;  %v257_v59 = vsel %vm172_vm4, %v256_v1, %v2709_v40  ;;  %v50_v1 = vld [vmem:[#allocation2 + $0x20] sm:$0xff] }
  0x5a   :  { %v146_v46 = vand.u32 2147483647, %v145_v29  ;;  %vm2789_vm8 = vcmp.le.f32.partialorder %v170_v8, 0.7853982  ;;  %v333_v53 = vsel %vm331_vm6, %v332_v17, %v2765_v34  ;;  %v392_v55 = vand.u32 31, %v390_v47 }
  0x5b   :  { %v2795_v56 = vand.u32 3, %v2775_v28  ;;  %v244_v57 = vshrl.u32 %v226_v44, %v242_v48  ;;  %v247_v54 = vadd.s32 127, %v246_v51  ;;  %v334_v6 = vadd.s32 %v333_v53, %v329_v45 }
  0x5c   :  { %v149_v62 = vmul.f32 %v148_v42, %v146_v46  ;;  %v2799_v40 = vsel %vm2789_vm8, 0, %v257_v59  ;;  %v386_v60 = vor.u32 8388608, %v2771_v38  ;;  %v393_v8 = vsub.s32 32, %v392_v55 }
  0x5d   :  { %v245_v61 = vor.u32 %v244_v57, %v243_v50  ;;  %v248_v63 = vshll.u32 %v247_v54, 23  ;;  %v335_v31 = vadd.s32 536870912, %v334_v6  ;;  %v395_v43 = vshll.u32 %v2529_v33, %v392_v55 }
  0x5e   :  { %v150_v58 = vxor.u32 2147483648, %v149_v62  ;;  %v396_v7 = vshrl.u32 %v2530_v35, %v393_v8  ;;  %v398_v9 = vshll.u32 %v2530_v35, %v392_v55  ;;  %v399_v10 = vshrl.u32 %v2531_v37, %v393_v8 }
  0x5f   :  { %v249_v15 = vor.u32 4788187, %v248_v63  ;;  %v252_v30 = vcvt.s32.f32 %v245_v61  ;;  %v2811_v18 = vshrl.u32 %v335_v31, 30  ;;  %v391_v12 = vshrl.u32 %v390_v47, 5 }
  0x60   :  { %v151_v2 = vsel %vm68_vm14, %v150_v58, %v149_v62  ;;  %v401_v19 = vshll.u32 %v2531_v37, %v392_v55  ;;  %v402_v20 = vshrl.u32 %v2532_v39, %v393_v8  ;;  %v394_v24 = vshrl.u32 %v2529_v33, %v393_v8 }
  0x61   :  { %v154_v11 = vsel %vm2722_vm2, %v2581_v3, %v151_v2  ;;  %v250_v21 = vand.u32 2147483647, %v249_v15  ;;  %v337_v22 = vshll.u32 %v2811_v18, 30  ;;  %v397_v25 = vor.u32 %v396_v7, %v395_v43 }
  0x62   :  { %2355 = vcosq.f32 %v154_v11  ;;  %v404_v52 = vshll.u32 %v2532_v39, %v392_v55  ;;  %v405_v34 = vshrl.u32 %v2533_v41, %v393_v8  ;;  %v407_v36 = vshll.u32 %v2533_v41, %v392_v55 }
  0x63   :  { %2357 = vsinq.f32 %v154_v11  ;;  %v253_v38 = vmul.f32 %v252_v30, %v250_v21  ;;  %v2820_v14 = vsub.s32 %v334_v6, %v337_v22  ;;  %v400_v29 = vor.u32 %v399_v10, %v398_v9 }
  0x64   :  { %v408_v42 = vshrl.u32 %v2534_v49, %v393_v8  ;;  %v2824_v44 = vand.u32 3, %v2799_v40  ;;  %v403_v45 = vor.u32 %v402_v20, %v401_v19  ;;  %v406_v46 = vor.u32 %v405_v34, %v404_v52 }
  0x65   :  { %vm410_vm9 = vcmp.lt.s32.totalorder %v391_v12, 1  ;;  %vm689_vm10 = vcmp.eq.s32.totalorder %v2795_v56, 2  ;;  %v254_v16 = vxor.u32 2147483648, %v253_v38  ;;  %vm276_vm11 = vcmp.lt.s32.totalorder %v2585_v5, 0 }
  0x66   :  { %v340_v17 = vsub.s32 0, %v2820_v14  ;;  %v2829_v47 = vshll.u32 %v386_v60, 8  ;;  %v2831_v48 = vmul.f32 0.20943952, %v50_v1  ;;  %vm686_vm12 = vcmp.eq.s32.totalorder %v2795_v56, 0 }
  0x67   :  { %v409_v50 = vor.u32 %v408_v42, %v407_v36  ;;  %vm411_vm13 = vcmp.lt.s32.totalorder %v391_v12, 2  ;;  %vm412_vm14 = vcmp.lt.s32.totalorder %v391_v12, 3  ;;  %vm413_vm15 = vcmp.lt.s32.totalorder %v391_v12, 4 }
  0x68   :  { %vm685_vm0 = vcmp.lt.s32.totalorder %v2795_v56, 2  ;;  %v255_v51 = vsel %vm172_vm4, %v254_v16, %v253_v38  ;;  %v2230_v59 = vmin.u32 %v340_v17, %v2820_v14  ;;  %v414_v62 = vsel %vm410_vm9, %v394_v24, %v397_v25 }
  0x69   :  { %v418_v53 = vsel %vm410_vm9, %v397_v25, %v400_v29  ;;  %vm158_vm1 = vweird.f32 %v2581_v3  ;;  %v258_v55 = vsel %vm2789_vm8, %v2583_v4, %v255_v51  ;;  %v415_v57 = vsel %vm413_vm15, %v403_v45, 2102212464 }
  0x6a   :  { %v419_v54 = vsel %vm413_vm15, %v406_v46, 920167782  ;;  %v422_v6 = vsel %vm410_vm9, %v400_v29, %v403_v45  ;;  %2359 = vcosq.f32 %v258_v55  ;;  %v342_v58 = vclz %v2230_v59 }
  0x6b   :  { %v416_v60 = vsel %vm412_vm14, %v400_v29, %v415_v57  ;;  %v420_v8 = vsel %vm412_vm14, %v403_v45, %v419_v54  ;;  %2361 = vsinq.f32 %v258_v55  ;;  %v360_v61 = vsub.s32 4, %v2811_v18 }
  0x6c   :  { %v421_v63 = vsel %vm411_vm13, %v418_v53, %v420_v8  ;;  %v423_v26 = vsel %vm413_vm15, %v409_v50, 1326507024  ;;  %v2231_v31 = vadd.s32 4294967294, %v342_v58  ;;  %v330_v9 = vadd.s32 %v2764_v32, %v2761_v23 }
  0x6d   :  { %v424_v43 = vsel %vm412_vm14, %v406_v46, %v423_v26  ;;  %v2854_v2 = vmul.u32.u64.low %v2829_v47, %v421_v63  ;;  %v2855_v7 = vmul.u32.u64.high %v2829_v47, %v421_v63, %v2854_v2  ;;  %v417_v10 = vsel %vm411_vm13, %v414_v62, %v416_v60 }
  0x6e   :  { %v425_v11 = vsel %vm411_vm13, %v422_v6, %v424_v43  ;;  %v482_v15 = vand.u32 2147483647, %v2831_v48  ;;  %vm2232_vm2 = vcmp.lt.s32.totalorder %v2231_v31, 0  ;;  %v485_v21 = vand.u32 2139095040, %v2831_v48 }
  0x6f   :  { %v2862_v30 = vpop.eup %2355  ;;  %v2865_v19 = vmul.u32.u64.low %v2829_v47, %v425_v11  ;;  %v2866_v20 = vmul.u32.u64.high %v2829_v47, %v425_v11, %v2865_v19  ;;  %v345_v23 = vsel %vm2232_vm2, 0, %v2231_v31  ;;  %v361_v32 = vsel %vm276_vm11, %v360_v61, %v2811_v18 }
  0x70   :  { %v2869_v22 = vpop.eup %2357  ;;  %v166_v24 = vxor.u32 2147483648, %v2862_v30  ;;  %v159_v12 = vadd.s32 3, %v2775_v28  ;;  %v346_v52 = vsub.s32 32, %v345_v23  ;;  %v347_v34 = vshll.u32 %v2820_v14, %v345_v23 }
  0x71   :  { %v163_v25 = vxor.u32 2147483648, %v2869_v22  ;;  %v350_v36 = vsub.s32 4294967266, %v345_v23  ;;  %v433_v38 = vmul.u32 %v2829_v47, %v417_v10  ;;  %v436_v29 = vadd.s32 1, %v2855_v7  ;;  %v56_v10 = vld [vmem:[#allocation5] sm:$0xff] }
  0x72   :  { %v691_v1 = vsel %vm689_vm10, %v166_v24, %v2869_v22  ;;  %v486_v42 = vshrl.u32 %v485_v21, 23  ;;  %vm262_vm3 = vweird.f32 %v2583_v4  ;;  %v348_v18 = vshrl.u32 %v330_v9, %v346_v52 }
  0x73   :  { %v688_v28 = vsel %vm686_vm12, %v2862_v30, %v163_v25  ;;  %v351_v14 = vadd.s32 127, %v350_v36  ;;  %v489_v45 = vand.u32 8388607, %v482_v15  ;;  %vm2895_vm4 = vcmp.le.f32.partialorder %v274_v27, 0.7853982 }
  0x74   :  { %v692_v46 = vsel %vm685_vm0, %v688_v28, %v691_v1  ;;  %vm435_vm5 = vc.u32 %v2866_v20, %v2854_v2  ;;  %v2237_v17 = vadd.s32 4294967169, %v486_v42  ;;  %v349_v50 = vor.u32 %v348_v18, %v347_v34 }
  0x75   :  { %v693_v47 = vsel %vm158_vm1, nan, %v692_v46  ;;  %v352_v51 = vshll.u32 %v351_v14, 23  ;;  %v437_v59 = vsel %vm435_vm5, %v436_v29, %v2855_v7  ;;  %vm788_vm6 = vcmp.lt.s32.totalorder %v2824_v44, 2 }
  0x76   :  { %1106 = vst [vmem:[#allocation8] sm:$0xff] %v693_v47  ;;  %v363_v56 = vsel %vm2895_vm4, 0, %v361_v32  ;;  %v438_v27 = vadd.s32 %v437_v59, %v433_v38  ;;  %v492_v62 = vadd.s32 1, %v2237_v17  ;;  %v356_v55 = vcvt.s32.f32 %v349_v50 }
  0x77   :  { %v353_v53 = vor.u32 4788187, %v352_v51  ;;  %v490_v57 = vor.u32 8388608, %v489_v45  ;;  %v2906_v54 = vand.u32 3, %v159_v12  ;;  %v2908_v6 = vpop.eup %2359  ;;  %vm789_vm7 = vcmp.eq.s32.totalorder %v2824_v44, 0 }
  0x78   :  { %vm792_vm8 = vcmp.eq.s32.totalorder %v2824_v44, 2  ;;  %v439_v58 = vadd.s32 536870912, %v438_v27  ;;  %vm493_vm9 = vcmp.gt.s32.totalorder %v492_v62, 0  ;;  %v2912_v60 = vpop.eup %2361  ;;  %v270_v8 = vxor.u32 2147483648, %v2908_v6 }
  0x79   :  { %v354_v61 = vand.u32 2147483647, %v353_v53  ;;  %v2915_v63 = vand.u32 3, %v363_v56  ;;  %v494_v26 = vsel %vm493_vm9, %v492_v62, 0  ;;  %v267_v31 = vxor.u32 2147483648, %v2912_v60 }
  0x7a   :  { %v2919_v43 = vadd.s32 %v2854_v2, %v2866_v20  ;;  %v2921_v7 = vshrl.u32 %v439_v58, 30  ;;  %v496_v9 = vand.u32 31, %v494_v26  ;;  %v794_v11 = vsel %vm792_vm8, %v270_v8, %v2912_v60 }
  0x7b   :  { %v357_v19 = vmul.f32 %v356_v55, %v354_v61  ;;  %v2926_v21 = vshll.u32 %v490_v57, 8  ;;  %vm162_vm10 = vcmp.eq.s32.totalorder %v2906_v54, 0  ;;  %v791_v2 = vsel %vm789_vm7, %v2908_v6, %v267_v31 }
  0x7c   :  { %v441_v20 = vshll.u32 %v2921_v7, 30  ;;  %v497_v23 = vsub.s32 32, %v496_v9  ;;  %v263_v32 = vadd.s32 3, %v2799_v40  ;;  %v795_v12 = vsel %vm788_vm6, %v791_v2, %v794_v11 }
  0x7d   :  { %v358_v52 = vxor.u32 2147483648, %v357_v19  ;;  %v2938_v34 = vadd.s32 3, %v363_v56  ;;  %v2940_v36 = vmul.f32 0.5235988, %v56_v10  ;;  %v796_v1 = vsel %vm262_vm3, nan, %v795_v12 }
  0x7e   :  { %v2944_v38 = vsub.s32 %v438_v27, %v441_v20  ;;  %v499_v29 = vshll.u32 %v2529_v33, %v496_v9  ;;  %v2948_v42 = vsel %vm162_vm10, %v2862_v30, %v163_v25  ;;  %1107 = vst [vmem:[#allocation8 + $0x8] sm:$0xff] %v796_v1  ;;  %v500_v44 = vshrl.u32 %v2530_v35, %v497_v23 }
  0x7f   :  { %v359_v40 = vsel %vm276_vm11, %v358_v52, %v357_v19  ;;  %v502_v28 = vshll.u32 %v2530_v35, %v496_v9  ;;  %v503_v18 = vshrl.u32 %v2531_v37, %v497_v23  ;;  %v495_v46 = vshrl.u32 %v494_v26, 5 }
  0x80   :  { %v362_v14 = vsel %vm2895_vm4, %v2585_v5, %v359_v40  ;;  %v444_v45 = vsub.s32 0, %v2944_v38  ;;  %v505_v25 = vshll.u32 %v2531_v37, %v496_v9  ;;  %v506_v17 = vshrl.u32 %v2532_v39, %v497_v23 }
  0x81   :  { %2363 = vcosq.f32 %v362_v14  ;;  %vm165_vm11 = vcmp.eq.s32.totalorder %v2906_v54, 2  ;;  %v2962_v47 = vand.u32 3, %v263_v32  ;;  %v498_v51 = vshrl.u32 %v2529_v33, %v497_v23 }
  0x82   :  { %2365 = vsinq.f32 %v362_v14  ;;  %v2234_v50 = vmin.u32 %v444_v45, %v2944_v38  ;;  %v501_v59 = vor.u32 %v500_v44, %v499_v29  ;;  %vm161_vm12 = vcmp.lt.s32.totalorder %v2906_v54, 2 }
  0x83   :  { %v504_v16 = vor.u32 %v503_v18, %v502_v28  ;;  %v507_v56 = vor.u32 %v506_v17, %v505_v25  ;;  %v508_v27 = vshll.u32 %v2532_v39, %v496_v9  ;;  %v509_v62 = vshrl.u32 %v2533_v41, %v497_v23 }
  0x84   :  { %v446_v53 = vclz %v2234_v50  ;;  %v511_v55 = vshll.u32 %v2533_v41, %v496_v9  ;;  %v512_v57 = vshrl.u32 %v2534_v49, %v497_v23  ;;  %vm514_vm13 = vcmp.lt.s32.totalorder %v495_v46, 1 }
  0x85   :  { %v510_v58 = vor.u32 %v509_v62, %v508_v27  ;;  %vm515_vm14 = vcmp.lt.s32.totalorder %v495_v46, 2  ;;  %vm516_vm15 = vcmp.lt.s32.totalorder %v495_v46, 3  ;;  %vm517_vm0 = vcmp.lt.s32.totalorder %v495_v46, 4 }
  0x86   :  { %vm895_vm2 = vcmp.eq.s32.totalorder %v2915_v63, 2  ;;  %v2235_v61 = vadd.s32 4294967294, %v446_v53  ;;  %v513_v26 = vor.u32 %v512_v57, %v511_v55  ;;  %v518_v10 = vsel %vm514_vm13, %v498_v51, %v501_v59 }
  0x87   :  { %v519_v11 = vsel %vm517_vm0, %v507_v56, 2102212464  ;;  %vm892_vm4 = vcmp.eq.s32.totalorder %v2915_v63, 0  ;;  %v522_v2 = vsel %vm514_vm13, %v501_v59, %v504_v16  ;;  %v523_v9 = vsel %vm517_vm0, %v510_v58, 920167782 }
  0x88   :  { %v520_v19 = vsel %vm516_vm15, %v504_v16, %v519_v11  ;;  %v526_v20 = vsel %vm514_vm13, %v504_v16, %v507_v56  ;;  %vm891_vm5 = vcmp.lt.s32.totalorder %v2915_v63, 2  ;;  %vm380_vm6 = vcmp.lt.s32.totalorder %v2678_v0, 0 }
  0x89   :  { %vm2236_vm7 = vcmp.lt.s32.totalorder %v2235_v61, 0  ;;  %v464_v23 = vsub.s32 4, %v2921_v7  ;;  %v524_v32 = vsel %vm516_vm15, %v507_v56, %v523_v9  ;;  %v527_v12 = vsel %vm517_vm0, %v513_v26, 1326507024 }
  0x8a   :  { %vm366_vm8 = vweird.f32 %v2585_v5  ;;  %v449_v52 = vsel %vm2236_vm7, 0, %v2235_v61  ;;  %v521_v1 = vsel %vm515_vm14, %v518_v10, %v520_v19  ;;  %v525_v29 = vsel %vm515_vm14, %v522_v2, %v524_v32 }
  0x8b   :  { %v528_v40 = vsel %vm516_vm15, %v510_v58, %v527_v12  ;;  %v450_v44 = vsub.s32 32, %v449_v52  ;;  %v451_v28 = vshll.u32 %v2944_v38, %v449_v52  ;;  %v454_v18 = vsub.s32 4294967266, %v449_v52  ;;  %v57_v12 = vld [vmem:[#allocation5 + $0x8] sm:$0xff] }
  0x8c   :  { %v529_v14 = vsel %vm515_vm14, %v526_v20, %v528_v40  ;;  %v2992_v17 = vmul.u32.u64.low %v2926_v21, %v525_v29  ;;  %v2993_v50 = vmul.u32.u64.high %v2926_v21, %v525_v29, %v2992_v17  ;;  %vm2998_vm9 = vcmp.le.f32.partialorder %v378_v13, 0.7853982 }
  0x8d   :  { %v2988_v45 = vmul.u32.u64.low %v2926_v21, %v529_v14  ;;  %v2989_v25 = vmul.u32.u64.high %v2926_v21, %v529_v14, %v2988_v45  ;;  %v452_v38 = vshrl.u32 %v2919_v43, %v450_v44  ;;  %v455_v59 = vadd.s32 127, %v454_v18 }
  0x8e   :  { %v537_v46 = vmul.u32 %v2926_v21, %v521_v1  ;;  %v167_v16 = vsel %vm165_vm11, %v166_v24, %v2869_v22  ;;  %vm265_vm10 = vcmp.lt.s32.totalorder %v2962_v47, 2  ;;  %vm266_vm13 = vcmp.eq.s32.totalorder %v2962_v47, 0  ;;  %v2364_v13 = vpop.eup %2363 }
  0x8f   :  { %v168_v56 = vsel %vm161_vm12, %v2948_v42, %v167_v16  ;;  %vm269_vm14 = vcmp.eq.s32.totalorder %v2962_v47, 2  ;;  %v453_v43 = vor.u32 %v452_v38, %v451_v28  ;;  %v456_v27 = vshll.u32 %v455_v59, 23  ;;  %v2366_v22 = vpop.eup %2365 }
  0x90   :  { %v169_v21 = vsel %vm158_vm1, nan, %v168_v56  ;;  %v268_v30 = vsel %vm266_vm13, %v2908_v6, %v267_v31  ;;  %v374_v24 = vxor.u32 2147483648, %v2364_v13  ;;  %vm539_vm11 = vc.u32 %v2989_v25, %v2992_v17 }
  0x91   :  { %v540_v54 = vadd.s32 1, %v2993_v50  ;;  %586 = vst [vmem:[#allocation7] sm:$0xff] %v169_v21  ;;  %v368_v42 = vand.u32 3, %v2938_v34  ;;  %v371_v62 = vxor.u32 2147483648, %v2366_v22  ;;  %v457_v53 = vor.u32 4788187, %v456_v27 }
  0x92   :  { %v460_v55 = vcvt.s32.f32 %v453_v43  ;;  %v271_v3 = vsel %vm269_vm14, %v270_v8, %v2912_v60  ;;  %v897_v31 = vsel %vm895_vm2, %v374_v24, %v2366_v22  ;;  %v465_v57 = vsel %vm380_vm6, %v464_v23, %v2921_v7 }
  0x93   :  { %v541_v58 = vsel %vm539_vm11, %v540_v54, %v2993_v50  ;;  %v272_v61 = vsel %vm265_vm10, %v268_v30, %v271_v3  ;;  %v894_v34 = vsel %vm892_vm4, %v2364_v13, %v371_v62  ;;  %v458_v26 = vand.u32 2147483647, %v457_v53 }
  0x94   :  { %v542_v10 = vadd.s32 %v541_v58, %v537_v46  ;;  %v273_v6 = vsel %vm262_vm3, nan, %v272_v61  ;;  %v898_v60 = vsel %vm891_vm5, %v894_v34, %v897_v31  ;;  %vm369_vm1 = vcmp.lt.s32.totalorder %v368_v42, 2 }
  0x95   :  { %587 = vst [vmem:[#allocation7 + $0x8] sm:$0xff] %v273_v6  ;;  %vm370_vm12 = vcmp.eq.s32.totalorder %v368_v42, 0  ;;  %vm373_vm15 = vcmp.eq.s32.totalorder %v368_v42, 2  ;;  %v899_v8 = vsel %vm366_vm8, nan, %v898_v60  ;;  %v461_v7 = vmul.f32 %v460_v55, %v458_v26 }
  0x96   :  { %v543_v47 = vadd.s32 536870912, %v542_v10  ;;  %v372_v11 = vsel %vm370_vm12, %v2364_v13, %v371_v62  ;;  %1108 = vst [vmem:[#allocation8 + $0x10] sm:$0xff] %v899_v8  ;;  %v467_v19 = vsel %vm2998_vm9, 0, %v465_v57  ;;  %v375_v2 = vsel %vm373_vm15, %v374_v24, %v2366_v22 }
  0x97   :  { %v462_v4 = vxor.u32 2147483648, %v461_v7  ;;  %v376_v20 = vsel %vm369_vm1, %v372_v11, %v375_v2  ;;  %v1114_v63 = vand.u32 2139095040, %v2940_v36  ;;  %v1111_v32 = vand.u32 2147483647, %v2940_v36 }
  0x98   :  { %v544_v9 = vshrl.u32 %v543_v47, 30  ;;  %v377_v23 = vsel %vm366_vm8, nan, %v376_v20  ;;  %v471_v40 = vadd.s32 3, %v467_v19  ;;  %v3056_v18 = vmul.f32 0.5235988, %v57_v12 }
  0x99   :  { %v463_v52 = vsel %vm380_vm6, %v462_v4, %v461_v7  ;;  %588 = vst [vmem:[#allocation7 + $0x10] sm:$0xff] %v377_v23  ;;  %v1115_v44 = vshrl.u32 %v1114_v63, 23  ;;  %v1118_v45 = vand.u32 8388607, %v1111_v32  ;;  %v3060_v50 = vand.u32 3, %v467_v19 }
  0x9a   :  { %v545_v1 = vshll.u32 %v544_v9, 30  ;;  %v466_v29 = vsel %vm2998_vm9, %v2678_v0, %v463_v52  ;;  %v568_v5 = vsub.s32 4, %v544_v9  ;;  %v3063_v59 = vand.u32 3, %v471_v40 }
  0x9b   :  { %2367 = vcosq.f32 %v466_v29  ;;  %v2261_v14 = vadd.s32 4294967169, %v1115_v44  ;;  %v1218_v46 = vand.u32 2139095040, %v3056_v18  ;;  %vm3068_vm3 = vcmp.le.f32.partialorder %v482_v15, 0.7853982 }
  0x9c   :  { %v3054_v28 = vsub.s32 %v542_v10, %v545_v1  ;;  %2369 = vsinq.f32 %v466_v29  ;;  %vm484_vm0 = vcmp.lt.s32.totalorder %v2831_v48, 0  ;;  %v1119_v43 = vor.u32 8388608, %v1118_v45 }
  0x9d   :  { %v1121_v51 = vadd.s32 1, %v2261_v14  ;;  %v569_v13 = vsel %vm484_vm0, %v568_v5, %v544_v9  ;;  %v1219_v27 = vshrl.u32 %v1218_v46, 23  ;;  %vm995_vm4 = vcmp.eq.s32.totalorder %v3060_v50, 0 }
  0x9e   :  { %v548_v38 = vsub.s32 0, %v3054_v28  ;;  %vm998_vm5 = vcmp.eq.s32.totalorder %v3060_v50, 2  ;;  %v538_v15 = vadd.s32 %v2992_v17, %v2989_v25  ;;  %vm994_vm6 = vcmp.lt.s32.totalorder %v3060_v50, 2 }
  0x9f   :  { %vm1122_vm2 = vcmp.gt.s32.totalorder %v1121_v51, 0  ;;  %vm473_vm7 = vcmp.lt.s32.totalorder %v3063_v59, 2  ;;  %vm474_vm8 = vcmp.eq.s32.totalorder %v3063_v59, 0  ;;  %vm477_vm9 = vcmp.eq.s32.totalorder %v3063_v59, 2 }
  0xa0   :  { %v2238_v56 = vmin.u32 %v548_v38, %v3054_v28  ;;  %v1123_v30 = vsel %vm1122_vm2, %v1121_v51, 0  ;;  %vm470_vm10 = vweird.f32 %v2678_v0  ;;  %v3089_v54 = vsel %vm3068_vm3, 0, %v569_v13 }
  0xa1   :  { %v3084_v22 = vshrl.u32 %v1123_v30, 5  ;;  %v1125_v25 = vand.u32 31, %v1123_v30  ;;  %v1215_v17 = vand.u32 2147483647, %v3056_v18  ;;  %v3094_v42 = vshll.u32 %v1119_v43, 8 }
  0xa2   :  { %v550_v21 = vclz %v2238_v56  ;;  %v2265_v62 = vadd.s32 4294967169, %v1219_v27 }
  0xa3   :  { %vm1143_vm13 = vcmp.lt.s32.totalorder %v3084_v22, 1  ;;  %vm1146_vm14 = vcmp.lt.s32.totalorder %v3084_v22, 4  ;;  %v1126_v53 = vsub.s32 32, %v1125_v25  ;;  %v1128_v55 = vshll.u32 %v2529_v33, %v1125_v25 }
  0xa4   :  { %v2239_v24 = vadd.s32 4294967294, %v550_v21  ;;  %v1131_v3 = vshll.u32 %v2530_v35, %v1125_v25  ;;  %vm1145_vm1 = vcmp.lt.s32.totalorder %v3084_v22, 3  ;;  %v1134_v57 = vshll.u32 %v2531_v37, %v1125_v25 }
  0xa5   :  { %v1137_v58 = vshll.u32 %v2532_v39, %v1125_v25  ;;  %v1140_v61 = vshll.u32 %v2533_v41, %v1125_v25  ;;  %vm1144_vm12 = vcmp.lt.s32.totalorder %v3084_v22, 2  ;;  %v1127_v6 = vshrl.u32 %v2529_v33, %v1126_v53 }
  0xa6   :  { %vm2240_vm11 = vcmp.lt.s32.totalorder %v2239_v24, 0  ;;  %v1129_v8 = vshrl.u32 %v2530_v35, %v1126_v53  ;;  %v1132_v7 = vshrl.u32 %v2531_v37, %v1126_v53  ;;  %v1135_v47 = vshrl.u32 %v2532_v39, %v1126_v53 }
  0xa7   :  { %v553_v31 = vsel %vm2240_vm11, 0, %v2239_v24  ;;  %v1138_v11 = vshrl.u32 %v2533_v41, %v1126_v53  ;;  %v1141_v20 = vshrl.u32 %v2534_v49, %v1126_v53  ;;  %v1222_v53 = vand.u32 8388607, %v1215_v17 }
  0xa8   :  { %v554_v34 = vsub.s32 32, %v553_v31  ;;  %v555_v26 = vshll.u32 %v3054_v28, %v553_v31  ;;  %v558_v10 = vsub.s32 4294967266, %v553_v31  ;;  %v2368_v60 = vpop.eup %2367  ;;  %v1130_v23 = vor.u32 %v1129_v8, %v1128_v55 }
  0xa9   :  { %v2370_v19 = vpop.eup %2369  ;;  %v478_v2 = vxor.u32 2147483648, %v2368_v60  ;;  %v1133_v12 = vor.u32 %v1132_v7, %v1131_v3  ;;  %v1136_v52 = vor.u32 %v1135_v47, %v1134_v57  ;;  %v1139_v14 = vor.u32 %v1138_v11, %v1137_v58 }
  0xaa   :  { %v556_v4 = vshrl.u32 %v538_v15, %v554_v34  ;;  %v559_v9 = vadd.s32 127, %v558_v10  ;;  %v475_v63 = vxor.u32 2147483648, %v2370_v19  ;;  %v1142_v45 = vor.u32 %v1141_v20, %v1140_v61 }
  0xab   :  { %v1000_v1 = vsel %vm998_vm5, %v478_v2, %v2370_v19  ;;  %v479_v44 = vsel %vm477_vm9, %v478_v2, %v2370_v19  ;;  %v1147_v27 = vsel %vm1143_vm13, %v1127_v6, %v1130_v23  ;;  %v1148_v15 = vsel %vm1146_vm14, %v1136_v52, 2102212464 }
  0xac   :  { %v557_v29 = vor.u32 %v556_v4, %v555_v26  ;;  %v560_v40 = vshll.u32 %v559_v9, 23  ;;  %v997_v28 = vsel %vm995_vm4, %v2368_v60, %v475_v63  ;;  %v476_v5 = vsel %vm474_vm8, %v2368_v60, %v475_v63 }
  0xad   :  { %v1001_v38 = vsel %vm994_vm6, %v997_v28, %v1000_v1  ;;  %v480_v56 = vsel %vm473_vm7, %v476_v5, %v479_v44  ;;  %v1149_v21 = vsel %vm1145_vm1, %v1133_v12, %v1148_v15  ;;  %v1151_v59 = vsel %vm1143_vm13, %v1130_v23, %v1133_v12  ;;  %v58_v15 = vld [vmem:[#allocation5 + $0x10] sm:$0xff] }
  0xae   :  { %v561_v51 = vor.u32 4788187, %v560_v40  ;;  %v564_v46 = vcvt.s32.f32 %v557_v29  ;;  %v1002_v13 = vsel %vm470_vm10, nan, %v1001_v38  ;;  %v481_v43 = vsel %vm470_vm10, nan, %v480_v56 }
  0xaf   :  { %1109 = vst [vmem:[#allocation8 + $0x18] sm:$0xff] %v1002_v13  ;;  %589 = vst [vmem:[#allocation7 + $0x18] sm:$0xff] %v481_v43  ;;  %v1152_v30 = vsel %vm1146_vm14, %v1139_v14, 920167782  ;;  %v1155_v24 = vsel %vm1143_vm13, %v1133_v12, %v1136_v52  ;;  %v1156_v25 = vsel %vm1146_vm14, %v1142_v45, 1326507024  ;;  %v1150_v3 = vsel %vm1144_vm12, %v1147_v27, %v1149_v21 }
  0xb0   :  { %v562_v50 = vand.u32 2147483647, %v561_v51  ;;  %v1153_v0 = vsel %vm1145_vm1, %v1136_v52, %v1152_v30  ;;  %v1157_v57 = vsel %vm1145_vm1, %v1139_v14, %v1156_v25  ;;  %v1225_v26 = vadd.s32 1, %v2265_v62 }
  0xb1   :  { %v1154_v31 = vsel %vm1144_vm12, %v1151_v59, %v1153_v0  ;;  %v1158_v58 = vsel %vm1144_vm12, %v1155_v24, %v1157_v57  ;;  %v3164_v7 = vand.u32 3, %v3089_v54  ;;  %v1166_v22 = vmul.u32 %v3094_v42, %v1150_v3 }
  0xb2   :  { %v565_v55 = vmul.f32 %v564_v46, %v562_v50  ;;  %v3153_v61 = vmul.u32.u64.low %v3094_v42, %v1154_v31  ;;  %v3154_v34 = vmul.u32.u64.high %v3094_v42, %v1154_v31, %v3153_v61  ;;  %vm1226_vm15 = vcmp.gt.s32.totalorder %v1225_v26, 0 }
  0xb3   :  { %v3158_v6 = vmul.u32.u64.low %v3094_v42, %v1158_v58  ;;  %v3159_v60 = vmul.u32.u64.high %v3094_v42, %v1158_v58, %v3158_v6  ;;  %v1227_v47 = vsel %vm1226_vm15, %v1225_v26, 0  ;;  %v1223_v19 = vor.u32 8388608, %v1222_v53 }
  0xb4   :  { %v566_v10 = vxor.u32 2147483648, %v565_v55  ;;  %v1169_v62 = vadd.s32 1, %v3154_v34  ;;  %v1229_v2 = vand.u32 31, %v1227_v47  ;;  %v575_v4 = vadd.s32 3, %v3089_v54 }
  0xb5   :  { %v1228_v9 = vshrl.u32 %v1227_v47, 5  ;;  %v3182_v40 = vshll.u32 %v1223_v19, 8  ;;  %vm574_vm6 = vweird.f32 %v2831_v48  ;;  %vm1097_vm7 = vcmp.lt.s32.totalorder %v3164_v7, 2 }
  0xb6   :  { %v567_v8 = vsel %vm484_vm0, %v566_v10, %v565_v55  ;;  %vm1168_vm0 = vc.u32 %v3159_v60, %v3153_v61  ;;  %v1230_v42 = vsub.s32 32, %v1229_v2  ;;  %v1232_v63 = vshll.u32 %v2529_v33, %v1229_v2 }
  0xb7   :  { %v570_v11 = vsel %vm3068_vm3, %v2831_v48, %v567_v8  ;;  %v1170_v20 = vsel %vm1168_vm0, %v1169_v62, %v3154_v34  ;;  %v1235_v16 = vshll.u32 %v2530_v35, %v1229_v2  ;;  %v1238_v12 = vshll.u32 %v2531_v37, %v1229_v2 }
  0xb8   :  { %2371 = vcosq.f32 %v570_v11  ;;  %v1171_v23 = vadd.s32 %v1170_v20, %v1166_v22  ;;  %v1241_v52 = vshll.u32 %v2532_v39, %v1229_v2  ;;  %v1233_v1 = vshrl.u32 %v2530_v35, %v1230_v42 }
  0xb9   :  { %2373 = vsinq.f32 %v570_v11  ;;  %v1236_v54 = vshrl.u32 %v2531_v37, %v1230_v42  ;;  %v1239_v29 = vshrl.u32 %v2532_v39, %v1230_v42  ;;  %v1242_v28 = vshrl.u32 %v2533_v41, %v1230_v42 }
  0xba   :  { %v1172_v44 = vadd.s32 536870912, %v1171_v23  ;;  %v1244_v5 = vshll.u32 %v2533_v41, %v1229_v2  ;;  %v1245_v14 = vshrl.u32 %v2534_v49, %v1230_v42  ;;  %v1234_v45 = vor.u32 %v1233_v1, %v1232_v63 }
  0xbb   :  { %v1237_v38 = vor.u32 %v1236_v54, %v1235_v16  ;;  %v1240_v51 = vor.u32 %v1239_v29, %v1238_v12  ;;  %vm1247_vm3 = vcmp.lt.s32.totalorder %v1228_v9, 1  ;;  %v1231_v56 = vshrl.u32 %v2529_v33, %v1230_v42 }
  0xbc   :  { %v1173_v46 = vshrl.u32 %v1172_v44, 30  ;;  %v1243_v13 = vor.u32 %v1242_v28, %v1241_v52  ;;  %v1246_v43 = vor.u32 %v1245_v14, %v1244_v5  ;;  %vm1248_vm2 = vcmp.lt.s32.totalorder %v1228_v9, 2 }
  0xbd   :  { %vm1249_vm4 = vcmp.lt.s32.totalorder %v1228_v9, 3  ;;  %vm1250_vm5 = vcmp.lt.s32.totalorder %v1228_v9, 4  ;;  %v1255_v27 = vsel %vm1247_vm3, %v1234_v45, %v1237_v38  ;;  %vm1113_vm8 = vcmp.lt.s32.totalorder %v2940_v36, 0 }
  0xbe   :  { %v1174_v50 = vshll.u32 %v1173_v46, 30  ;;  %v1252_v21 = vsel %vm1250_vm5, %v1240_v51, 2102212464  ;;  %v1256_v59 = vsel %vm1250_vm5, %v1243_v13, 920167782  ;;  %v576_v30 = vand.u32 3, %v575_v4 }
  0xbf   :  { %v1257_v0 = vsel %vm1249_vm4, %v1240_v51, %v1256_v59  ;;  %v1259_v24 = vsel %vm1247_vm3, %v1237_v38, %v1240_v51  ;;  %v1260_v25 = vsel %vm1250_vm5, %v1246_v43, 1326507024  ;;  %v1251_v55 = vsel %vm1247_vm3, %v1231_v56, %v1234_v45 }
  0xc0   :  { %v3194_v53 = vsub.s32 %v1171_v23, %v1174_v50  ;;  %v1258_v3 = vsel %vm1248_vm2, %v1255_v27, %v1257_v0  ;;  %v3198_v31 = vmul.f32 0.5235988, %v58_v15  ;;  %v1253_v57 = vsel %vm1249_vm4, %v1237_v38, %v1252_v21 }
  0xc1   :  { %v1261_v58 = vsel %vm1249_vm4, %v1243_v13, %v1260_v25  ;;  %v3203_v34 = vmul.u32.u64.low %v3182_v40, %v1258_v3  ;;  %v3204_v26 = vmul.u32.u64.high %v3182_v40, %v1258_v3, %v3203_v34  ;;  %vm1098_vm9 = vcmp.eq.s32.totalorder %v3164_v7, 0 }
  0xc2   :  { %vm1101_vm10 = vcmp.eq.s32.totalorder %v3164_v7, 2  ;;  %v1177_v10 = vsub.s32 0, %v3194_v53  ;;  %v1262_v6 = vsel %vm1248_vm2, %v1259_v24, %v1261_v58  ;;  %vm581_vm13 = vcmp.eq.s32.totalorder %v576_v30, 2  ;;  %v59_v7 = vld [vmem:[#allocation5 + $0x18] sm:$0xff] }
  0xc3   :  { %v1197_v22 = vsub.s32 4, %v1173_v46  ;;  %v3212_v47 = vmul.u32.u64.low %v3182_v40, %v1262_v6  ;;  %v3213_v11 = vmul.u32.u64.high %v3182_v40, %v1262_v6, %v3212_v47  ;;  %vm578_vm14 = vcmp.eq.s32.totalorder %v576_v30, 0 }
  0xc4   :  { %v2262_v2 = vmin.u32 %v1177_v10, %v3194_v53  ;;  %v1254_v4 = vsel %vm1248_vm2, %v1251_v55, %v1253_v57  ;;  %vm577_vm11 = vcmp.lt.s32.totalorder %v576_v30, 2  ;;  %v1319_v42 = vand.u32 2147483647, %v3198_v31 }
  0xc5   :  { %v2372_v8 = vpop.eup %2371  ;;  %v1322_v63 = vand.u32 2139095040, %v3198_v31  ;;  %v1273_v52 = vadd.s32 1, %v3204_v26  ;;  %v1198_v9 = vsel %vm1113_vm8, %v1197_v22, %v1173_v46  ;;  %v1270_v29 = vmul.u32 %v3182_v40, %v1254_v4 }
  0xc6   :  { %v2374_v62 = vpop.eup %2373  ;;  %v582_v19 = vxor.u32 2147483648, %v2372_v8  ;;  %v1179_v12 = vclz %v2262_v2  ;;  %vm3231_vm1 = vcmp.le.f32.partialorder %v1111_v32, 0.7853982  ;;  %vm1272_vm12 = vc.u32 %v3213_v11, %v3203_v34 }
  0xc7   :  { %v579_v20 = vxor.u32 2147483648, %v2374_v62  ;;  %v1323_v40 = vshrl.u32 %v1322_v63, 23  ;;  %v1167_v32 = vadd.s32 %v3153_v61, %v3159_v60  ;;  %v3245_v51 = vsel %vm3231_vm1, 0, %v1198_v9 }
  0xc8   :  { %v1103_v23 = vsel %vm1101_vm10, %v582_v19, %v2374_v62  ;;  %v583_v16 = vsel %vm581_vm13, %v582_v19, %v2374_v62  ;;  %v2263_v14 = vadd.s32 4294967294, %v1179_v12  ;;  %v1274_v46 = vsel %vm1272_vm12, %v1273_v52, %v3204_v26 }
  0xc9   :  { %v1100_v1 = vsel %vm1098_vm9, %v2372_v8, %v579_v20  ;;  %v580_v54 = vsel %vm578_vm14, %v2372_v8, %v579_v20  ;;  %v1275_v48 = vadd.s32 %v1274_v46, %v1270_v29  ;;  %v2269_v13 = vadd.s32 4294967169, %v1323_v40 }
  0xca   :  { %v1104_v44 = vsel %vm1097_vm7, %v1100_v1, %v1103_v23  ;;  %v584_v28 = vsel %vm577_vm11, %v580_v54, %v583_v16  ;;  %vm2264_vm15 = vcmp.lt.s32.totalorder %v2263_v14, 0  ;;  %v1326_v43 = vand.u32 8388607, %v1319_v42 }
  0xcb   :  { %v1105_v45 = vsel %vm574_vm6, nan, %v1104_v44  ;;  %v585_v38 = vsel %vm574_vm6, nan, %v584_v28  ;;  %v1182_v56 = vsel %vm2264_vm15, 0, %v2263_v14  ;;  %v3251_v21 = vmul.f32 0.5235988, %v59_v7 }
  0xcc   :  { %1110 = vst [vmem:[#allocation8 + $0x20] sm:$0xff] %v1105_v45  ;;  %590 = vst [vmem:[#allocation7 + $0x20] sm:$0xff] %v585_v38  ;;  %v1183_v27 = vsub.s32 32, %v1182_v56  ;;  %v1184_v15 = vshll.u32 %v3194_v53, %v1182_v56  ;;  %v1187_v50 = vsub.s32 4294967266, %v1182_v56  ;;  %v1276_v61 = vadd.s32 536870912, %v1275_v48 }
  0xcd   :  { %v1329_v60 = vadd.s32 1, %v2269_v13  ;;  %v1204_v0 = vadd.s32 3, %v3245_v51  ;;  %v1327_v25 = vor.u32 8388608, %v1326_v43  ;;  %v1426_v57 = vand.u32 2139095040, %v3251_v21 }
  0xce   :  { %v1185_v59 = vshrl.u32 %v1167_v32, %v1183_v27  ;;  %v1188_v30 = vadd.s32 127, %v1187_v50  ;;  %v1277_v24 = vshrl.u32 %v1276_v61, 30 }
  0xcf   :  { %vm1330_vm0 = vcmp.gt.s32.totalorder %v1329_v60, 0 }
  0xd0   :  { %v1186_v55 = vor.u32 %v1185_v59, %v1184_v15  ;;  %v1189_v3 = vshll.u32 %v1188_v30, 23  ;;  %v1331_v53 = vsel %vm1330_vm0, %v1329_v60, 0 }
  0xd1   :  { %2446 = shalt.err (!%p2443_p0)
}
  0xd2   :  { %2179 = dma.vmem_to_hbm [thread:$0]  %s2174_s1, 640, %s3595_s3, [#allocation9], %s2526_s21, %s2526_s21, %s2527_s22   ;;  %vm1217_vm3 = vcmp.lt.s32.totalorder %v3056_v18, 0  ;;  %v1278_v58 = vshll.u32 %v1277_v24, 30  ;;  %v1333_v26 = vand.u32 31, %v1331_v53  ;;  %v1193_v6 = vcvt.s32.f32 %v1186_v55 }
  0xd3   :  { %v1190_v10 = vor.u32 4788187, %v1189_v3  ;;  %v3262_v8 = vand.u32 3, %v1204_v0  ;;  %v3266_v22 = vadd.s32 %v3203_v34, %v3213_v11  ;;  %s2455_s10 = scalar_lea.vmem %s2162_s6, 640  ;;  %p2460_p2 = scmp.lt.s32.totalorder %s2162_s6, %s2162_s6 }
  0xd4   :  { %p2456_p1 = scmp.ne.s32.totalorder %s2162_s6, %s2455_s10  ;;  %p2461_p3 = scmp.lt.s32.totalorder %s2455_s10, %s2455_s10 }
  0xd6   :  { %p2462_p4 = por %p2461_p3, %p2460_p2 }
  0xd8   :  { %p2463_p5 = pnand %p2462_p4, %p2456_p1 }
  0xda   :  { %2466 = shalt.err (!%p2463_p5)
}
  0xdb   :  { %2167 = dma.vmem_to_hbm [thread:$0]  %s2162_s6, 640, %s3594_s2, [#allocation4], %s2526_s21, %s2526_s21, %s2527_s22   ;;  %v3274_v47 = vsub.s32 %v1275_v48, %v1278_v58  ;;  %v1334_v62 = vsub.s32 32, %v1333_v26  ;;  %v3276_v19 = vshll.u32 %v1327_v25, 8  ;;  %v1423_v34 = vand.u32 2147483647, %v3251_v21 }
  0xdc   :  { %v1191_v11 = vand.u32 2147483647, %v1190_v10  ;;  %v1301_v2 = vsub.s32 4, %v1277_v24  ;;  %v1336_v4 = vshll.u32 %v2529_v33, %v1333_v26  ;;  %v1427_v20 = vshrl.u32 %v1426_v57, 23  ;;  %s2537_s2 = smov [#allocation10]   ;;  %s2538_s13 = smov [#allocation11]  }
  0xdd   :  { %v1281_v63 = vsub.s32 0, %v3274_v47  ;;  %v1337_v23 = vshrl.u32 %v2530_v35, %v1334_v62  ;;  %v1339_v16 = vshll.u32 %v2530_v35, %v1333_v26  ;;  %v1342_v12 = vshll.u32 %v2531_v37, %v1333_v26  ;;  %s2185_s12 = sshll.u32 %s2537_s2, 4  ;;  %s2197_s14 = sshll.u32 %s2538_s13, 4  ;;  %s2186_s12 = int_to_ptr.vmem [resolvable:$true] %s2185_s12  ;;  %s2198_s14 = int_to_ptr.vmem [resolvable:$true] %s2197_s14 }
  0xde   :  { %v1194_v52 = vmul.f32 %v1193_v6, %v1191_v11  ;;  %v1340_v1 = vshrl.u32 %v2531_v37, %v1334_v62  ;;  %v1343_v54 = vshrl.u32 %v2532_v39, %v1334_v62  ;;  %v1345_v9 = vshll.u32 %v2532_v39, %v1333_v26  ;;  %s2475_s15 = scalar_lea.vmem %s2186_s12, 640  ;;  %p2480_p7 = scmp.lt.s32.totalorder %s2186_s12, %s2186_s12 }
  0xdf   :  { %v2266_v29 = vmin.u32 %v1281_v63, %v3274_v47  ;;  %v1332_v44 = vshrl.u32 %v1331_v53, 5  ;;  %v1346_v28 = vshrl.u32 %v2533_v41, %v1334_v62  ;;  %v3291_v14 = vand.u32 8388607, %v1423_v34  ;;  %p2476_p6 = scmp.ne.s32.totalorder %s2186_s12, %s2475_s15  ;;  %p2481_p8 = scmp.lt.s32.totalorder %s2475_s15, %s2475_s15 }
  0xe0   :  { %v1195_v45 = vxor.u32 2147483648, %v1194_v52  ;;  %v1302_v38 = vsel %vm1217_vm3, %v1301_v2, %v1277_v24  ;;  %v1348_v40 = vshll.u32 %v2533_v41, %v1333_v26  ;;  %v2273_v7 = vadd.s32 4294967169, %v1427_v20  ;;  %v60_v20 = vld [vmem:[#allocation5 + $0x20] sm:$0xff] }
  0xe1   :  { %v1283_v32 = vclz %v2266_v29  ;;  %v1335_v46 = vshrl.u32 %v2529_v33, %v1334_v62  ;;  %v1338_v56 = vor.u32 %v1337_v23, %v1336_v4  ;;  %v1341_v48 = vor.u32 %v1340_v1, %v1339_v16  ;;  %p2482_p9 = por %p2481_p8, %p2480_p7 }
  0xe2   :  { %v1196_v13 = vsel %vm1113_vm8, %v1195_v45, %v1194_v52  ;;  %v1344_v43 = vor.u32 %v1343_v54, %v1342_v12  ;;  %v1347_v27 = vor.u32 %v1346_v28, %v1345_v9  ;;  %v1349_v15 = vshrl.u32 %v2534_v49, %v1334_v62 }
  0xe3   :  { %v1199_v50 = vsel %vm3231_vm1, %v2940_v36, %v1196_v13  ;;  %vm3305_vm2 = vcmp.le.f32.partialorder %v1215_v17, 0.7853982  ;;  %v2267_v60 = vadd.s32 4294967294, %v1283_v32  ;;  %vm1351_vm4 = vcmp.lt.s32.totalorder %v1332_v44, 1  ;;  %p2483_p10 = pnand %p2482_p9, %p2476_p6 }
  0xe4   :  { %vm1352_vm5 = vcmp.lt.s32.totalorder %v1332_v44, 2  ;;  %2375 = vcosq.f32 %v1199_v50  ;;  %v1350_v59 = vor.u32 %v1349_v15, %v1348_v40  ;;  %vm1353_vm6 = vcmp.lt.s32.totalorder %v1332_v44, 3 }
  0xe5   :  { %vm1354_vm7 = vcmp.lt.s32.totalorder %v1332_v44, 4  ;;  %2377 = vsinq.f32 %v1199_v50  ;;  %vm2268_vm8 = vcmp.lt.s32.totalorder %v2267_v60, 0  ;;  %v1355_v30 = vsel %vm1351_vm4, %v1335_v46, %v1338_v56 }
  0xe6   :  { %v1356_v0 = vsel %vm1354_vm7, %v1344_v43, 2102212464  ;;  %v1286_v5 = vsel %vm2268_vm8, 0, %v2267_v60  ;;  %v1359_v17 = vsel %vm1351_vm4, %v1338_v56, %v1341_v48  ;;  %v1360_v25 = vsel %vm1354_vm7, %v1347_v27, 920167782 }
  0xe7   :  { %v1357_v24 = vsel %vm1353_vm6, %v1341_v48, %v1356_v0  ;;  %v1287_v55 = vsub.s32 32, %v1286_v5  ;;  %v1288_v3 = vshll.u32 %v3274_v47, %v1286_v5  ;;  %v1291_v53 = vsub.s32 4294967266, %v1286_v5 }
  0xe8   :  { %v1363_v57 = vsel %vm1351_vm4, %v1341_v48, %v1344_v43  ;;  %v1358_v58 = vsel %vm1352_vm5, %v1355_v30, %v1357_v24  ;;  %v1361_v26 = vsel %vm1353_vm6, %v1344_v43, %v1360_v25  ;;  %v1364_v10 = vsel %vm1354_vm7, %v1350_v59, 1326507024 }
  0xe9   :  { %v1433_v6 = vadd.s32 1, %v2273_v7  ;;  %v1289_v62 = vshrl.u32 %v3266_v22, %v1287_v55  ;;  %v1292_v11 = vadd.s32 127, %v1291_v53  ;;  %v1362_v2 = vsel %vm1352_vm5, %v1359_v17, %v1361_v26 }
  0xea   :  { %v1365_v4 = vsel %vm1353_vm6, %v1347_v27, %v1364_v10  ;;  %v3321_v47 = vmul.u32.u64.low %v3276_v19, %v1362_v2  ;;  %v3322_v23 = vmul.u32.u64.high %v3276_v19, %v1362_v2, %v3321_v47  ;;  %vm1203_vm10 = vweird.f32 %v2940_v36 }
  0xeb   :  { %v1366_v63 = vsel %vm1352_vm5, %v1363_v57, %v1365_v4  ;;  %vm1434_vm9 = vcmp.gt.s32.totalorder %v1433_v6, 0  ;;  %v1290_v16 = vor.u32 %v1289_v62, %v1288_v3  ;;  %v1293_v12 = vshll.u32 %v1292_v11, 23 }
  0xec   :  { %v3326_v52 = vmul.u32.u64.low %v3276_v19, %v1366_v63  ;;  %v3327_v1 = vmul.u32.u64.high %v3276_v19, %v1366_v63, %v3326_v52  ;;  %vm1206_vm13 = vcmp.lt.s32.totalorder %v3262_v8, 2  ;;  %v3333_v22 = vsel %vm3305_vm2, 0, %v1302_v38 }
  0xed   :  { %v1435_v54 = vsel %vm1434_vm9, %v1433_v6, 0  ;;  %v3335_v9 = vmul.f32 0.5235988, %v60_v20  ;;  %v1294_v29 = vor.u32 4788187, %v1293_v12  ;;  %v1297_v44 = vcvt.s32.f32 %v1290_v16 }
  0xee   :  { %v1374_v28 = vmul.u32 %v3276_v19, %v1358_v58  ;;  %v1437_v45 = vand.u32 31, %v1435_v54  ;;  %vm1207_vm14 = vcmp.eq.s32.totalorder %v3262_v8, 0  ;;  %vm1210_vm11 = vcmp.eq.s32.totalorder %v3262_v8, 2 }
  0xef   :  { %v1377_v40 = vadd.s32 1, %v3322_v23  ;;  %v1431_v7 = vor.u32 8388608, %v3291_v14  ;;  %v1295_v32 = vand.u32 2147483647, %v1294_v29  ;;  %v1308_v38 = vadd.s32 3, %v3333_v22 }
  0xf0   :  { %vm1376_vm1 = vc.u32 %v3327_v1, %v3321_v47  ;;  %v1438_v46 = vsub.s32 32, %v1437_v45  ;;  %v3346_v48 = vshrl.u32 %v1435_v54, 5  ;;  %v1440_v19 = vshll.u32 %v2529_v33, %v1437_v45 }
  0xf1   :  { %v1378_v56 = vsel %vm1376_vm1, %v1377_v40, %v3322_v23  ;;  %v1530_v13 = vand.u32 2139095040, %v3335_v9  ;;  %v3350_v43 = vpop.eup %2375  ;;  %v1298_v27 = vmul.f32 %v1297_v44, %v1295_v32  ;;  %v1443_v50 = vshll.u32 %v2530_v35, %v1437_v45 }
  0xf2   :  { %v1379_v15 = vadd.s32 %v1378_v56, %v1374_v28  ;;  %v1441_v14 = vshrl.u32 %v2530_v35, %v1438_v46  ;;  %v3354_v60 = vpop.eup %2377  ;;  %v1211_v59 = vxor.u32 2147483648, %v3350_v43  ;;  %v1439_v30 = vshrl.u32 %v2529_v33, %v1438_v46 }
  0xf3   :  { %v1444_v0 = vshrl.u32 %v2531_v37, %v1438_v46  ;;  %v1446_v5 = vshll.u32 %v2531_v37, %v1437_v45  ;;  %v1208_v24 = vxor.u32 2147483648, %v3354_v60  ;;  %v1299_v17 = vxor.u32 2147483648, %v1298_v27 }
  0xf4   :  { %v1380_v25 = vadd.s32 536870912, %v1379_v15  ;;  %v1449_v55 = vshll.u32 %v2532_v39, %v1437_v45  ;;  %v1212_v3 = vsel %vm1210_vm11, %v1211_v59, %v3354_v60  ;;  %v1442_v53 = vor.u32 %v1441_v14, %v1440_v19 }
  0xf5   :  { %v1447_v57 = vshrl.u32 %v2532_v39, %v1438_v46  ;;  %v1450_v58 = vshrl.u32 %v2533_v41, %v1438_v46  ;;  %v1209_v26 = vsel %vm1207_vm14, %v3350_v43, %v1208_v24  ;;  %v1300_v10 = vsel %vm1217_vm3, %v1299_v17, %v1298_v27 }
  0xf6   :  { %v1381_v6 = vshrl.u32 %v1380_v25, 30  ;;  %v1452_v62 = vshll.u32 %v2533_v41, %v1437_v45  ;;  %v1213_v11 = vsel %vm1206_vm13, %v1209_v26, %v1212_v3  ;;  %v1303_v2 = vsel %vm3305_vm2, %v3056_v18, %v1300_v10 }
  0xf7   :  { %v1445_v4 = vor.u32 %v1444_v0, %v1443_v50  ;;  %v1453_v20 = vshrl.u32 %v2534_v49, %v1438_v46  ;;  %v1214_v63 = vsel %vm1203_vm10, nan, %v1213_v11  ;;  %2379 = vcosq.f32 %v1303_v2 }
  0xf8   :  { %v1382_v23 = vshll.u32 %v1381_v6, 30  ;;  %v1451_v16 = vor.u32 %v1450_v58, %v1449_v55  ;;  %1631 = vst [vmem:[#allocation10] sm:$0xff] %v1214_v63  ;;  %2381 = vsinq.f32 %v1303_v2  ;;  %v1448_v12 = vor.u32 %v1447_v57, %v1446_v5 }
  0xf9   :  { %v1454_v52 = vor.u32 %v1453_v20, %v1452_v62  ;;  %vm1455_vm12 = vcmp.lt.s32.totalorder %v3346_v48, 1  ;;  %vm1457_vm15 = vcmp.lt.s32.totalorder %v3346_v48, 3  ;;  %vm1458_vm0 = vcmp.lt.s32.totalorder %v3346_v48, 4 }
  0xfa   :  { %v3386_v8 = vsub.s32 %v1379_v15, %v1382_v23  ;;  %v1471_v61 = vshll.u32 %v1431_v7, 8  ;;  %v3390_v54 = vand.u32 3, %v1308_v38  ;;  %vm1456_vm3 = vcmp.lt.s32.totalorder %v3346_v48, 2 }
  0xfb   :  { %v1460_v29 = vsel %vm1458_vm0, %v1448_v12, 2102212464  ;;  %v1463_v44 = vsel %vm1455_vm12, %v1442_v53, %v1445_v4  ;;  %v1405_v45 = vsub.s32 4, %v1381_v6  ;;  %v1464_v40 = vsel %vm1458_vm0, %v1451_v16, 920167782 }
  0xfc   :  { %v1385_v28 = vsub.s32 0, %v3386_v8  ;;  %v1531_v32 = vshrl.u32 %v1530_v13, 23  ;;  %v1459_v46 = vsel %vm1455_vm12, %v1439_v30, %v1442_v53  ;;  %v1465_v56 = vsel %vm1457_vm15, %v1448_v12, %v1464_v40 }
  0xfd   :  { %v1467_v19 = vsel %vm1455_vm12, %v1445_v4, %v1448_v12  ;;  %v1468_v27 = vsel %vm1458_vm0, %v1454_v52, 1326507024  ;;  %v1461_v7 = vsel %vm1457_vm15, %v1445_v4, %v1460_v29  ;;  %v1466_v38 = vsel %vm1456_vm3, %v1463_v44, %v1465_v56 }
  0xfe   :  { %v2270_v15 = vmin.u32 %v1385_v28, %v3386_v8  ;;  %v1469_v14 = vsel %vm1457_vm15, %v1451_v16, %v1468_v27  ;;  %vm1321_vm2 = vcmp.lt.s32.totalorder %v3198_v31, 0  ;;  %v1527_v17 = vand.u32 2147483647, %v3335_v9 }
  0xff   :  { %v1470_v13 = vsel %vm1456_vm3, %v1467_v19, %v1469_v14  ;;  %v3406_v50 = vmul.u32.u64.low %v1471_v61, %v1466_v38  ;;  %v3407_v30 = vmul.u32.u64.high %v1471_v61, %v1466_v38, %v3406_v50  ;;  %v1406_v5 = vsel %vm1321_vm2, %v1405_v45, %v1381_v6 }
 0x100   :  { %v1387_v0 = vclz %v2270_v15  ;;  %v1462_v25 = vsel %vm1456_vm3, %v1459_v46, %v1461_v7  ;;  %v3415_v55 = vmul.u32.u64.low %v1471_v61, %v1470_v13  ;;  %v3416_v3 = vmul.u32.u64.high %v1471_v61, %v1470_v13, %v3415_v55 }
 0x101   :  { %v2277_v53 = vadd.s32 4294967169, %v1531_v32  ;;  %vm1307_vm4 = vweird.f32 %v3056_v18  ;;  %vm1310_vm5 = vcmp.lt.s32.totalorder %v3390_v54, 2  ;;  %vm3422_vm6 = vcmp.le.f32.partialorder %v1319_v42, 0.7853982 }
 0x102   :  { %v2271_v58 = vadd.s32 4294967294, %v1387_v0  ;;  %vm1311_vm7 = vcmp.eq.s32.totalorder %v3390_v54, 0  ;;  %vm1314_vm8 = vcmp.eq.s32.totalorder %v3390_v54, 2  ;;  %v1481_v48 = vadd.s32 1, %v3407_v30 }
 0x103   :  { %v1537_v26 = vadd.s32 1, %v2277_v53  ;;  %v1375_v10 = vadd.s32 %v3321_v47, %v3327_v1  ;;  %v3433_v6 = vsel %vm3422_vm6, 0, %v1406_v5  ;;  %v1478_v42 = vmul.u32 %v1471_v61, %v1462_v25 }
 0x104   :  { %vm2272_vm9 = vcmp.lt.s32.totalorder %v2271_v58, 0  ;;  %v3435_v62 = vpop.eup %2379  ;;  %vm1480_vm13 = vc.u32 %v3416_v3, %v3406_v50  ;;  %v1534_v2 = vand.u32 8388607, %v1527_v17  ;;  %v3447_v16 = vadd.s32 3, %v3433_v6 }
 0x105   :  { %v1390_v11 = vsel %vm2272_vm9, 0, %v2271_v58  ;;  %vm1538_vm14 = vcmp.gt.s32.totalorder %v1537_v26, 0  ;;  %v3441_v4 = vpop.eup %2381  ;;  %v1315_v47 = vxor.u32 2147483648, %v3435_v62  ;;  %v1482_v12 = vsel %vm1480_vm13, %v1481_v48, %v3407_v30 }
 0x106   :  { %v1391_v1 = vsub.s32 32, %v1390_v11  ;;  %v1392_v20 = vshll.u32 %v3386_v8, %v1390_v11  ;;  %v1395_v63 = vsub.s32 4294967266, %v1390_v11  ;;  %v1312_v23 = vxor.u32 2147483648, %v3441_v4 }
 0x107   :  { %v1539_v52 = vsel %vm1538_vm14, %v1537_v26, 0  ;;  %v1316_v61 = vsel %vm1314_vm8, %v1315_v47, %v3441_v4  ;;  %v1483_v28 = vadd.s32 %v1482_v12, %v1478_v42  ;;  %v1535_v45 = vor.u32 8388608, %v1534_v2 }
 0x108   :  { %v1393_v29 = vshrl.u32 %v1375_v10, %v1391_v1  ;;  %v1396_v44 = vadd.s32 127, %v1395_v63  ;;  %v1313_v8 = vsel %vm1311_vm7, %v3435_v62, %v1312_v23  ;;  %v1541_v40 = vand.u32 31, %v1539_v52 }
 0x109   :  { %v3461_v32 = vand.u32 3, %v3245_v51  ;;  %v1317_v46 = vsel %vm1310_vm5, %v1313_v8, %v1316_v61  ;;  %v1484_v27 = vadd.s32 536870912, %v1483_v28  ;;  %v1540_v7 = vshrl.u32 %v1539_v52, 5 }
 0x10a   :  { %v1394_v56 = vor.u32 %v1393_v29, %v1392_v20  ;;  %v1397_v19 = vshll.u32 %v1396_v44, 23  ;;  %v1318_v15 = vsel %vm1307_vm4, nan, %v1317_v46  ;;  %v1542_v38 = vsub.s32 32, %v1541_v40 }
 0x10b   :  { %v3468_v14 = vand.u32 3, %v3333_v22  ;;  %1632 = vst [vmem:[#allocation10 + $0x8] sm:$0xff] %v1318_v15  ;;  %v3470_v0 = vshrl.u32 %v1484_v27, 30  ;;  %v1544_v51 = vshll.u32 %v2529_v33, %v1541_v40  ;;  %v1547_v5 = vshll.u32 %v2530_v35, %v1541_v40 }
 0x10c   :  { %v1398_v13 = vor.u32 4788187, %v1397_v19  ;;  %v1401_v30 = vcvt.s32.f32 %v1394_v56  ;;  %v1545_v54 = vshrl.u32 %v2530_v35, %v1542_v38  ;;  %v1548_v25 = vshrl.u32 %v2531_v37, %v1542_v38 }
 0x10d   :  { %v1550_v55 = vshll.u32 %v2531_v37, %v1541_v40  ;;  %v1486_v58 = vshll.u32 %v3470_v0, 30  ;;  %v1551_v22 = vshrl.u32 %v2532_v39, %v1542_v38  ;;  %v1553_v48 = vshll.u32 %v2532_v39, %v1541_v40 }
 0x10e   :  { %v1399_v53 = vand.u32 2147483647, %v1398_v13  ;;  %v1554_v26 = vshrl.u32 %v2533_v41, %v1542_v38  ;;  %v3481_v10 = vshll.u32 %v1535_v45, 8  ;;  %vm1730_vm11 = vcmp.lt.s32.totalorder %v3461_v32, 2 }
 0x10f   :  { %vm1731_vm1 = vcmp.eq.s32.totalorder %v3461_v32, 0  ;;  %v3485_v42 = vsub.s32 %v1483_v28, %v1486_v58  ;;  %v1543_v37 = vshrl.u32 %v2529_v33, %v1542_v38  ;;  %v1556_v11 = vshll.u32 %v2533_v41, %v1541_v40 }
 0x110   :  { %v1402_v35 = vmul.f32 %v1401_v30, %v1399_v53  ;;  %v1546_v2 = vor.u32 %v1545_v54, %v1544_v51  ;;  %v1549_v1 = vor.u32 %v1548_v25, %v1547_v5  ;;  %v1555_v20 = vor.u32 %v1554_v26, %v1553_v48 }
 0x111   :  { %v1557_v39 = vshrl.u32 %v2534_v49, %v1542_v38  ;;  %v1489_v12 = vsub.s32 0, %v3485_v42  ;;  %v1552_v52 = vor.u32 %v1551_v22, %v1550_v55  ;;  %vm1559_vm12 = vcmp.lt.s32.totalorder %v1540_v7, 1 }
 0x112   :  { %v1403_v63 = vxor.u32 2147483648, %v1402_v35  ;;  %v1479_v61 = vadd.s32 %v3406_v50, %v3416_v3  ;;  %vm1562_vm15 = vcmp.lt.s32.totalorder %v1540_v7, 4  ;;  %vm1734_vm0 = vcmp.eq.s32.totalorder %v3461_v32, 2 }
 0x113   :  { %v1558_v29 = vor.u32 %v1557_v39, %v1556_v11  ;;  %v2274_v41 = vmin.u32 %v1489_v12, %v3485_v42  ;;  %vm1561_vm3 = vcmp.lt.s32.totalorder %v1540_v7, 3  ;;  %v1564_v49 = vsel %vm1562_vm15, %v1552_v52, 2102212464 }
 0x114   :  { %v1404_v33 = vsel %vm1321_vm2, %v1403_v63, %v1402_v35  ;;  %vm1560_vm5 = vcmp.lt.s32.totalorder %v1540_v7, 2  ;;  %v1567_v28 = vsel %vm1559_vm12, %v1546_v2, %v1549_v1  ;;  %v1568_v50 = vsel %vm1562_vm15, %v1555_v20, 920167782 }
 0x115   :  { %v1407_v44 = vsel %vm3422_vm6, %v3198_v31, %v1404_v33  ;;  %v1491_v3 = vclz %v2274_v41  ;;  %v1563_v8 = vsel %vm1559_vm12, %v1543_v37, %v1546_v2  ;;  %v1565_v45 = vsel %vm1561_vm3, %v1549_v1, %v1564_v49 }
 0x116   :  { %2383 = vcosq.f32 %v1407_v44  ;;  %v1569_v40 = vsel %vm1561_vm3, %v1552_v52, %v1568_v50  ;;  %v1733_v57 = vsel %vm1731_vm1, %v3350_v43, %v1208_v24  ;;  %v1736_v46 = vsel %vm1734_vm0, %v1211_v59, %v3354_v60 }
 0x117   :  { %2385 = vsinq.f32 %v1407_v44  ;;  %v2275_v56 = vadd.s32 4294967294, %v1491_v3  ;;  %v1570_v19 = vsel %vm1560_vm5, %v1567_v28, %v1569_v40  ;;  %v1571_v27 = vsel %vm1559_vm12, %v1549_v1, %v1552_v52 }
 0x118   :  { %v1572_v15 = vsel %vm1562_vm15, %v1558_v29, 1326507024  ;;  %v1566_v38 = vsel %vm1560_vm5, %v1563_v8, %v1565_v45  ;;  %v3522_v30 = vmul.u32.u64.low %v3481_v10, %v1570_v19  ;;  %v3523_v24 = vmul.u32.u64.high %v3481_v10, %v1570_v19, %v3522_v30 }
 0x119   :  { %v1573_v13 = vsel %vm1561_vm3, %v1555_v20, %v1572_v15  ;;  %vm2276_vm2 = vcmp.lt.s32.totalorder %v2275_v56, 0  ;;  %v1737_v60 = vsel %vm1730_vm11, %v1733_v57, %v1736_v46  ;;  %vm1833_vm6 = vcmp.lt.s32.totalorder %v3468_v14, 2 }
 0x11a   :  { %v1574_v43 = vsel %vm1560_vm5, %v1571_v27, %v1573_v13  ;;  %v1494_v59 = vsel %vm2276_vm2, 0, %v2275_v56  ;;  %v1738_v5 = vsel %vm1203_vm10, nan, %v1737_v60  ;;  %vm1834_vm7 = vcmp.eq.s32.totalorder %v3468_v14, 0 }
 0x11b   :  { %v3531_v51 = vmul.u32.u64.low %v3481_v10, %v1574_v43  ;;  %v3532_v54 = vmul.u32.u64.high %v3481_v10, %v1574_v43, %v3531_v51  ;;  %v1495_v25 = vsub.s32 32, %v1494_v59  ;;  %v1496_v55 = vshll.u32 %v3485_v42, %v1494_v59  ;;  %2151 = vst [vmem:[#allocation11] sm:$0xff] %v1738_v5 }
 0x11c   :  { %v1499_v53 = vsub.s32 4294967266, %v1494_v59  ;;  %v1582_v32 = vmul.u32 %v3481_v10, %v1566_v38  ;;  %v1585_v7 = vadd.s32 1, %v3523_v24  ;;  %v1836_v58 = vsel %vm1834_vm7, %v3435_v62, %v1312_v23 }
 0x11d   :  { %vm1837_vm8 = vcmp.eq.s32.totalorder %v3468_v14, 2  ;;  %v1497_v22 = vshrl.u32 %v1479_v61, %v1495_v25  ;;  %v1413_v26 = vand.u32 3, %v3447_v16  ;;  %vm1584_vm10 = vc.u32 %v3532_v54, %v3522_v30 }
 0x11e   :  { %v1500_v36 = vadd.s32 127, %v1499_v53  ;;  %v1839_v48 = vsel %vm1837_vm8, %v1315_v47, %v3441_v4  ;;  %v1935_v35 = vand.u32 3, %v3433_v6  ;;  %v1586_v37 = vsel %vm1584_vm10, %v1585_v7, %v3523_v24 }
 0x11f   :  { %v1840_v10 = vsel %vm1833_vm6, %v1836_v58, %v1839_v48  ;;  %v1498_v42 = vor.u32 %v1497_v22, %v1496_v55  ;;  %v1587_v2 = vadd.s32 %v1586_v37, %v1582_v32  ;;  %vm1411_vm9 = vweird.f32 %v3198_v31 }
 0x120   :  { %v1501_v23 = vshll.u32 %v1500_v36, 23  ;;  %v1841_v11 = vsel %vm1307_vm4, nan, %v1840_v10  ;;  %vm1418_vm13 = vcmp.eq.s32.totalorder %v1413_v26, 2  ;;  %vm1940_vm14 = vcmp.eq.s32.totalorder %v1935_v35, 2 }
 0x121   :  { %2152 = vst [vmem:[#allocation11 + $0x8] sm:$0xff] %v1841_v11  ;;  %v1505_v4 = vcvt.s32.f32 %v1498_v42  ;;  %v1588_v16 = vadd.s32 536870912, %v1587_v2  ;;  %vm1415_vm11 = vcmp.eq.s32.totalorder %v1413_v26, 0  ;;  %vm1937_vm1 = vcmp.eq.s32.totalorder %v1935_v35, 0 }
 0x122   :  { %v1502_v62 = vor.u32 4788187, %v1501_v23  ;;  %vm1414_vm12 = vcmp.lt.s32.totalorder %v1413_v26, 2  ;;  %vm1936_vm4 = vcmp.lt.s32.totalorder %v1935_v35, 2  ;;  %v1509_v12 = vsub.s32 4, %v3470_v0 }
 0x123   :  { %v2384_v47 = vpop.eup %2383  ;;  %v3557_v39 = vshrl.u32 %v1588_v16, 30  ;;  %vm1425_vm15 = vcmp.lt.s32.totalorder %v3251_v21, 0  ;;  %vm1424_vm0 = vcmp.le.f32.partialorder %v1423_v34, 0.7853982  ;;  %v1583_v15 = vadd.s32 %v3522_v30, %v3532_v54 }
 0x124   :  { %v2386_v14 = vpop.eup %2385  ;;  %v1419_v6 = vxor.u32 2147483648, %v2384_v47  ;;  %v1503_v1 = vand.u32 2147483647, %v1502_v62  ;;  %v1510_v45 = vsel %vm1425_vm15, %v1509_v12, %v3470_v0 }
 0x125   :  { %v1416_v20 = vxor.u32 2147483648, %v2386_v14  ;;  %v1590_v29 = vshll.u32 %v3557_v39, 30  ;;  %v1512_v46 = vsel %vm1424_vm0, 0, %v1510_v45  ;;  %v1613_v37 = vsub.s32 4, %v3557_v39 }
 0x126   :  { %v1420_v18 = vsel %vm1418_vm13, %v1419_v6, %v2386_v14  ;;  %v1506_v63 = vmul.f32 %v1505_v4, %v1503_v1  ;;  %v1942_v52 = vsel %vm1940_vm14, %v1419_v6, %v2386_v14  ;;  %v1516_v19 = vadd.s32 3, %v1512_v46 }
 0x127   :  { %v1417_v61 = vsel %vm1415_vm11, %v2384_v47, %v1416_v20  ;;  %v1939_v33 = vsel %vm1937_vm1, %v2384_v47, %v1416_v20  ;;  %v1591_v50 = vsub.s32 %v1587_v2, %v1590_v29  ;;  %v2038_v43 = vand.u32 3, %v1512_v46 }
 0x128   :  { %v1421_v41 = vsel %vm1414_vm12, %v1417_v61, %v1420_v18  ;;  %v1507_v49 = vxor.u32 2147483648, %v1506_v63  ;;  %v1943_v44 = vsel %vm1936_vm4, %v1939_v33, %v1942_v52  ;;  %v1517_v31 = vand.u32 3, %v1516_v19 }
 0x129   :  { %v1422_v28 = vsel %vm1411_vm9, nan, %v1421_v41  ;;  %v1944_v3 = vsel %vm1411_vm9, nan, %v1943_v44  ;;  %v1593_v57 = vsub.s32 0, %v1591_v50  ;;  %vm2043_vm2 = vcmp.eq.s32.totalorder %v2038_v43, 2 }
 0x12a   :  { %1633 = vst [vmem:[#allocation10 + $0x10] sm:$0xff] %v1422_v28  ;;  %v1508_v8 = vsel %vm1425_vm15, %v1507_v49, %v1506_v63  ;;  %2153 = vst [vmem:[#allocation11 + $0x10] sm:$0xff] %v1944_v3  ;;  %vm1522_vm5 = vcmp.eq.s32.totalorder %v1517_v31, 2  ;;  %vm1518_vm6 = vcmp.lt.s32.totalorder %v1517_v31, 2  ;;  %vm1519_vm7 = vcmp.eq.s32.totalorder %v1517_v31, 0 }
 0x12b   :  { %v1511_v40 = vsel %vm1424_vm0, %v3251_v21, %v1508_v8  ;;  %v2278_v34 = vmin.u32 %v1593_v57, %v1591_v50  ;;  %vm2040_vm8 = vcmp.eq.s32.totalorder %v2038_v43, 0  ;;  %vm2039_vm10 = vcmp.lt.s32.totalorder %v2038_v43, 2 }
 0x12c   :  { %2387 = vcosq.f32 %v1511_v40  ;;  %vm1515_vm9 = vweird.f32 %v3251_v21  ;;  %vm1529_vm13 = vcmp.lt.s32.totalorder %v3335_v9, 0  ;;  %vm1528_vm14 = vcmp.le.f32.partialorder %v1527_v17, 0.7853982 }
 0x12d   :  { %2389 = vsinq.f32 %v1511_v40  ;;  %v1595_v56 = vclz %v2278_v34  ;;  %v1614_v2 = vsel %vm1529_vm13, %v1613_v37, %v3557_v39 }
 0x12e   :  { %v1616_v4 = vsel %vm1528_vm14, 0, %v1614_v2 }
 0x12f   :  { %v2279_v27 = vadd.s32 4294967294, %v1595_v56  ;;  %v1620_v47 = vadd.s32 3, %v1616_v4  ;;  %v2141_v14 = vand.u32 3, %v1616_v4 }
 0x131   :  { %vm2280_vm3 = vcmp.lt.s32.totalorder %v2279_v27, 0  ;;  %v1621_v16 = vand.u32 3, %v1620_v47  ;;  %vm2146_vm1 = vcmp.eq.s32.totalorder %v2141_v14, 2  ;;  %vm2143_vm4 = vcmp.eq.s32.totalorder %v2141_v14, 0 }
 0x132   :  { %v1598_v38 = vsel %vm2280_vm3, 0, %v2279_v27  ;;  %vm2142_vm0 = vcmp.lt.s32.totalorder %v2141_v14, 2  ;;  %vm1619_vm3 = vweird.f32 %v3335_v9 }
 0x133   :  { %v1599_v13 = vsub.s32 32, %v1598_v38  ;;  %v1600_v24 = vshll.u32 %v1591_v50, %v1598_v38  ;;  %v1603_v0 = vsub.s32 4294967266, %v1598_v38  ;;  %vm1626_vm11 = vcmp.eq.s32.totalorder %v1621_v16, 2 }
 0x134   :  { %vm1623_vm12 = vcmp.eq.s32.totalorder %v1621_v16, 0  ;;  %vm1622_vm15 = vcmp.lt.s32.totalorder %v1621_v16, 2 }
 0x135   :  { %v1601_v60 = vshrl.u32 %v1583_v15, %v1599_v13  ;;  %v1604_v59 = vadd.s32 127, %v1603_v0 }
 0x137   :  { %v1602_v5 = vor.u32 %v1601_v60, %v1600_v24  ;;  %v1605_v25 = vshll.u32 %v1604_v59, 23 }
 0x139   :  { %v2388_v51 = vpop.eup %2387  ;;  %v1606_v54 = vor.u32 4788187, %v1605_v25  ;;  %v1609_v32 = vcvt.s32.f32 %v1602_v5 }
 0x13a   :  { %v2390_v55 = vpop.eup %2389  ;;  %v1523_v53 = vxor.u32 2147483648, %v2388_v51 }
 0x13b   :  { %v1520_v30 = vxor.u32 2147483648, %v2390_v55  ;;  %v1607_v36 = vand.u32 2147483647, %v1606_v54 }
 0x13c   :  { %v1524_v7 = vsel %vm1522_vm5, %v1523_v53, %v2390_v55  ;;  %v2045_v58 = vsel %vm2043_vm2, %v1523_v53, %v2390_v55 }
 0x13d   :  { %v1521_v22 = vsel %vm1519_vm7, %v2388_v51, %v1520_v30  ;;  %v2042_v48 = vsel %vm2040_vm8, %v2388_v51, %v1520_v30  ;;  %v1610_v42 = vmul.f32 %v1609_v32, %v1607_v36 }
 0x13e   :  { %v1525_v26 = vsel %vm1518_vm6, %v1521_v22, %v1524_v7  ;;  %v2046_v10 = vsel %vm2039_vm10, %v2042_v48, %v2045_v58 }
 0x13f   :  { %v1526_v35 = vsel %vm1515_vm9, nan, %v1525_v26  ;;  %v2047_v23 = vsel %vm1515_vm9, nan, %v2046_v10  ;;  %v1611_v21 = vxor.u32 2147483648, %v1610_v42 }
 0x140   :  { %1634 = vst [vmem:[#allocation10 + $0x18] sm:$0xff] %v1526_v35  ;;  %2154 = vst [vmem:[#allocation11 + $0x18] sm:$0xff] %v2047_v23 }
 0x141   :  { %v1612_v11 = vsel %vm1529_vm13, %v1611_v21, %v1610_v42 }
 0x142   :  { %v1615_v62 = vsel %vm1528_vm14, %v3335_v9, %v1612_v11 }
 0x143   :  { %2391 = vcosq.f32 %v1615_v62 }
 0x144   :  { %2393 = vsinq.f32 %v1615_v62 }
 0x150   :  { %v2392_v6 = vpop.eup %2391 }
 0x151   :  { %v2394_v1 = vpop.eup %2393  ;;  %v1627_v20 = vxor.u32 2147483648, %v2392_v6 }
 0x152   :  { %v1624_v17 = vxor.u32 2147483648, %v2394_v1 }
 0x153   :  { %v1628_v39 = vsel %vm1626_vm11, %v1627_v20, %v2394_v1  ;;  %v2148_v18 = vsel %vm2146_vm1, %v1627_v20, %v2394_v1 }
 0x154   :  { %v1625_v63 = vsel %vm1623_vm12, %v2392_v6, %v1624_v17  ;;  %v2145_v12 = vsel %vm2143_vm4, %v2392_v6, %v1624_v17 }
 0x155   :  { %v1629_v52 = vsel %vm1622_vm15, %v1625_v63, %v1628_v39  ;;  %v2149_v61 = vsel %vm2142_vm0, %v2145_v12, %v2148_v18 }
 0x156   :  { %v1630_v29 = vsel %vm1619_vm3, nan, %v1629_v52  ;;  %v2150_v33 = vsel %vm1619_vm3, nan, %v2149_v61 }
 0x157   :  { %1635 = vst [vmem:[#allocation10 + $0x20] sm:$0xff] %v1630_v29  ;;  %2155 = vst [vmem:[#allocation11 + $0x20] sm:$0xff] %v2150_v33 }
 0x158   :  { %2486 = shalt.err (!%p2483_p10)
}
 0x159   :  { %2191 = dma.vmem_to_hbm [thread:$0]  %s2186_s12, 640, %s3596_s4, [#allocation9], %s2526_s21, %s2526_s21, %s2527_s22  }
 0x15a   :  { %s2495_s18 = scalar_lea.vmem %s2198_s14, 640  ;;  %p2500_p12 = scmp.lt.s32.totalorder %s2198_s14, %s2198_s14 }
 0x15b   :  { %p2496_p11 = scmp.ne.s32.totalorder %s2198_s14, %s2495_s18  ;;  %p2501_p13 = scmp.lt.s32.totalorder %s2495_s18, %s2495_s18 }
 0x15d   :  { %p2502_p0 = por %p2501_p13, %p2500_p12 }
 0x15f   :  { %p2503_p1 = pnand %p2502_p0, %p2496_p11 }
 0x161   :  { %2506 = shalt.err (!%p2503_p1)
}
 0x162   :  { %2203 = dma.vmem_to_hbm [thread:$0]  %s2198_s14, 640, %s3597_s5, [#allocation12], %s2526_s21, %s2526_s21, %s2527_s22  }
 0x163   :  { %2519 = dma.done.wait [#allocation4], 640  }
 0x164   :  { %2520 = vsyncadd [#allocation4], 4294966656 }
 0x165   :  { %2521 = dma.done.wait [#allocation9], 1280  }
 0x166   :  { %2522 = vsyncadd [#allocation9], 4294966016 }
 0x167   :  { %2523 = dma.done.wait [#allocation12], 640  }
 0x168   :  { %2524 = vsyncadd [#allocation12], 4294966656 }
 0x169   :  { %2216 = vsyncpa [#allocation3], 1 }
 0x16a   :  { %2217 = vsyncpa [#allocation6], 1 }
 0x16b   :  { %2218 = vsyncpa [#allocation4], 1 }
 0x16c   :  { %2219 = vsyncpa [#allocation9], 1 }
 0x16d   :  { %2220 = vsyncpa [#allocation12], 1 }

</bundles_post_ra>
